<compile_context>
chip_gen: v6e
topology: v6e:2x2x1
jax: 0.10.0
libtpu: 0.0.40
codegen_flags: <defaults>
</compile_context>

<pallas_src>
import jax
import jax.numpy as jnp
from jax.experimental import pallas as pl
from jax.experimental.pallas import tpu as pltpu


# ----------------------------------------------------------------------------
# Kernel
# ----------------------------------------------------------------------------
def opv_kernel(x_ref,
               w_em1_ref, b_em1_ref,     # (in, 1000) cdt, (1, 1000) f32
               w_em2_ref, b_em2_ref,     # (1000, 500) cdt, (1, 500) f32
               wb1_ref, bb1_ref,         # merged head layer 1: (500, 64) cdt, (1, 64) f32
               wb2_ref, bb2_ref,         # merged head layer 2 (block-diag): (64, 4) cdt, (1, 4) f32
               out_ref):                 # (TB, 4) f32 -> columns: PCE, Voc, Jsc, FF
    cdt = x_ref.dtype

    def dense(h, w_ref, b_ref):
        # MXU matmul with f32 accumulation; bias-add/ReLU in f32.
        y = jnp.dot(h, w_ref[...], preferred_element_type=jnp.float32)
        y = y + b_ref[...]                       # biases are already f32
        return jnp.maximum(y, 0.0)

    h = dense(x_ref[...], w_em1_ref, b_em1_ref).astype(cdt)   # (TB, 1000)
    h = dense(h, w_em2_ref, b_em2_ref).astype(cdt)            # (TB, 500)
    z = dense(h, wb1_ref, bb1_ref).astype(cdt)                # (TB, 64) -- 4 heads merged
    y = dense(z, wb2_ref, bb2_ref)                            # (TB, 4) f32
    out_ref[...] = y.astype(out_ref.dtype)


# ----------------------------------------------------------------------------
# Wrapper
# ----------------------------------------------------------------------------
def _round_up(n, m):
    return ((n + m - 1) // m) * m


def opv_forward(x, params, *, tb=2048, compute_dtype=jnp.bfloat16,
                vmem_limit_bytes=64 * 1024 * 1024):
    """x: (B, in_dims) f32. params: output of fold_and_merge (all f32).
    Returns (PCE, Voc, Jsc, FF), each (B, 1) f32."""
    B, in_dims = x.shape

    # Packing granularity along sublanes: 8 rows for 32-bit, 16 for bf16, 32 for 8-bit.
    itemsize = jnp.dtype(compute_dtype).itemsize
    gran = {4: 8, 2: 16, 1: 32}.get(itemsize, 8)

    # Cap the tile so small batches still split into >=2 grid steps (v7x: both TCs busy),
    # and keep tb a multiple of the packing granularity.
    tb = max(gran, min(_round_up(tb, gran), _round_up(pl.cdiv(B, 2), gran)))
    b_pad = _round_up(B, tb)

    x_p = x.astype(compute_dtype)
    if b_pad != B:
        x_p = jnp.pad(x_p, ((0, b_pad - B), (0, 0)))

    # Down-cast only the weight matrices (even indices); biases stay f32.
    params = tuple(p.astype(compute_dtype) if (i % 2 == 0) else p.astype(jnp.float32)
                   for i, p in enumerate(params))

    grid = (pl.cdiv(b_pad, tb),)
    const2d = lambda i: (0, 0)
    in_specs = [pl.BlockSpec((tb, in_dims), lambda i: (i, 0))]
    # Weights/biases: constant index_map + single buffer (they stay resident in VMEM).
    in_specs += [pl.BlockSpec(p.shape, const2d, pipeline_mode=pl.Buffered(1))
                 for p in params]
    out_specs = pl.BlockSpec((tb, 4), lambda i: (i, 0))

    flops = 2 * b_pad * (in_dims * 1000 + 1000 * 500 + 500 * 64 + 64 * 4)
    bytes_accessed = int(x_p.size * x_p.dtype.itemsize
                         + sum(p.size * p.dtype.itemsize for p in params)
                         + b_pad * 4 * 4)

    out = pl.pallas_call(
        opv_kernel,
        out_shape=jax.ShapeDtypeStruct((b_pad, 4), jnp.float32),
        grid=grid,
        in_specs=in_specs,
        out_specs=out_specs,
        compiler_params=pltpu.CompilerParams(
            dimension_semantics=("parallel",),
            vmem_limit_bytes=vmem_limit_bytes),
        cost_estimate=pl.CostEstimate(flops=flops, transcendentals=0,
                                      bytes_accessed=bytes_accessed),
    )(x_p, *params)

    out = out[:B]
    pce, voc, jsc, ff = jnp.split(out, 4, axis=1)
    return pce, voc, jsc, ff


# ----------------------------------------------------------------------------
# Parameter construction (PyTorch-style init) + BN folding / head merging
# ----------------------------------------------------------------------------
def _linear_init(key, fan_in, fan_out):
    kw, kb = jax.random.split(key)
    bound = 1.0 / jnp.sqrt(jnp.float32(fan_in))
    w = jax.random.uniform(kw, (fan_in, fan_out), jnp.float32, -bound, bound)
    b = jax.random.uniform(kb, (fan_out,), jnp.float32, -bound, bound)
    return w, b


_HEADS = ("PCE", "Voc", "Jsc", "FF")


def make_raw_params(key, in_dims):
    """Raw (unfolded) per-branch parameters, including non-trivial BN stats."""
    keys = jax.random.split(key, 6)
    raw = {}
    raw["w_em1"], raw["b_em1"] = _linear_init(keys[0], in_dims, 1000)
    raw["w_em2"], raw["b_em2"] = _linear_init(keys[1], 1000, 500)
    for i, name in enumerate(_HEADS):
        k1, k2, kbn = jax.random.split(keys[2 + i], 3)
        w1, b1 = _linear_init(k1, 500, 16)
        w2, b2 = _linear_init(k2, 16, 1)
        kg, kb, km, kv = jax.random.split(kbn, 4)
        bn = dict(
            gamma=jax.random.uniform(kg, (16,), jnp.float32, 0.5, 1.5),
            beta=jax.random.uniform(kb, (16,), jnp.float32, -0.5, 0.5),
            mean=jax.random.uniform(km, (16,), jnp.float32, -0.5, 0.5),
            var=jax.random.uniform(kv, (16,), jnp.float32, 0.5, 1.5),
        )
        raw[name] = dict(w1=w1, b1=b1, w2=w2, b2=b2, bn=bn)
    return raw


def fold_and_merge(raw, eps=1e-5):
    """Fold eval-mode BatchNorm into the adjacent Linear and merge the 4 heads."""
    b_em1 = raw["b_em1"][None, :]
    b_em2 = raw["b_em2"][None, :]

    wb1_cols, bb1_cols, wb2_cols, bb2_vals = [], [], [], []
    for name in _HEADS:
        br = raw[name]
        bn = br["bn"]
        scale = bn["gamma"] / jnp.sqrt(bn["var"] + eps)
        shift = bn["beta"] - bn["mean"] * scale
        w1, b1, w2, b2 = br["w1"], br["b1"], br["w2"], br["b2"]
        if name == "Voc":
            # Linear -> ReLU -> BN -> Linear : fold BN into the second Linear.
            w1f, b1f = w1, b1
            w2f = scale[:, None] * w2
            b2f = b2 + shift @ w2
        else:
            # Linear -> BN -> ReLU -> Linear : fold BN into the first Linear.
            w1f = w1 * scale[None, :]
            b1f = b1 * scale + shift
            w2f, b2f = w2, b2
        wb1_cols.append(w1f)
        bb1_cols.append(b1f)
        wb2_cols.append(w2f)
        bb2_vals.append(b2f)

    wb1 = jnp.concatenate(wb1_cols, axis=1)            # (500, 64)
    bb1 = jnp.concatenate(bb1_cols)[None, :]           # (1, 64)
    wb2 = jnp.zeros((64, 4), jnp.float32)
    for i, w in enumerate(wb2_cols):                   # block-diagonal (64, 4)
        wb2 = wb2.at[16 * i:16 * (i + 1), i].set(w[:, 0])
    bb2 = jnp.concatenate(bb2_vals)[None, :]           # (1, 4)

    return (raw["w_em1"], b_em1, raw["w_em2"], b_em2, wb1, bb1, wb2, bb2)


# ----------------------------------------------------------------------------
# Pure-JAX reference (mirrors the PyTorch module in eval mode, unfolded params)
# ----------------------------------------------------------------------------
def reference_forward(x, raw, eps=1e-5):
    h = jnp.maximum(x @ raw["w_em1"] + raw["b_em1"], 0.0)
    h = jnp.maximum(h @ raw["w_em2"] + raw["b_em2"], 0.0)

    def bn(z, p):
        scale = p["gamma"] / jnp.sqrt(p["var"] + eps)
        return (z - p["mean"]) * scale + p["beta"]

    outs = []
    for name in _HEADS:
        br = raw[name]
        z = h @ br["w1"] + br["b1"]
        if name == "Voc":
            z = bn(jnp.maximum(z, 0.0), br["bn"])
        else:
            z = jnp.maximum(bn(z, br["bn"]), 0.0)
        outs.append(jnp.maximum(z @ br["w2"] + br["b2"], 0.0))
    return tuple(outs)


if __name__ == "__main__":
    in_dims = 24
    batch = 10   # deliberately not a multiple of 8/16 -> exercises the padding path

    key = jax.random.PRNGKey(0)
    k_x, k_p = jax.random.split(key)
    x = jax.random.normal(k_x, (batch, in_dims), jnp.float32)

    raw = make_raw_params(k_p, in_dims)
    params = fold_and_merge(raw)
    ref = reference_forward(x, raw)

    # 1) f32 path: tight numerical check of the kernel math / BN folding.
    f32_fwd = jax.jit(lambda xx, pp: opv_forward(xx, pp, compute_dtype=jnp.float32))
    out32 = f32_fwd(x, params)
    jax.block_until_ready(out32)
    for got, want in zip(out32, ref):
        assert got.shape == (batch, 1)
        assert jnp.allclose(got, want, atol=1e-4, rtol=1e-4), \
            float(jnp.max(jnp.abs(got - want)))

    # 2) bf16 path (default, MXU-native): loose tolerance (f32 accumulation, bf16 operands).
    bf16_fwd = jax.jit(opv_forward)
    pce, voc, jsc, ff = bf16_fwd(x, params)
    jax.block_until_ready((pce, voc, jsc, ff))
    for got, want in zip((pce, voc, jsc, ff), ref):
        assert got.shape == (batch, 1)
        assert jnp.allclose(got, want, atol=1e-1, rtol=1e-1), \
            float(jnp.max(jnp.abs(got - want)))

    print("KERNEL_OK")
</pallas_src>

<mosaic_0001>
module attributes {stable_mosaic.version = 11 : i64} {
  func.func @opv_kernel(%arg0: i32, %arg1: memref<8x24xf32, #tpu.memory_space<vmem>>, %arg2: memref<24x1000xf32, #tpu.memory_space<vmem>>, %arg3: memref<1x1000xf32, #tpu.memory_space<vmem>>, %arg4: memref<1000x500xf32, #tpu.memory_space<vmem>>, %arg5: memref<1x500xf32, #tpu.memory_space<vmem>>, %arg6: memref<500x64xf32, #tpu.memory_space<vmem>>, %arg7: memref<1x64xf32, #tpu.memory_space<vmem>>, %arg8: memref<64x4xf32, #tpu.memory_space<vmem>>, %arg9: memref<1x4xf32, #tpu.memory_space<vmem>>, %arg10: memref<8x4xf32, #tpu.memory_space<vmem>>) attributes {dimension_semantics = [#tpu.dimension_semantics<parallel>], iteration_bounds = array<i64: 2>, scalar_prefetch = 0 : i64, scratch_operands = 0 : i64, tpu.core_type = #tpu.core_type<tc>, window_params = [{transform_indices = @transform_0, window_bounds = array<i64: 8, 24>}, {pipeline_mode = #tpu.pipeline_mode<synchronous>, transform_indices = @transform_1, window_bounds = array<i64: 24, 1000>}, {pipeline_mode = #tpu.pipeline_mode<synchronous>, transform_indices = @transform_2, window_bounds = array<i64: 1, 1000>}, {pipeline_mode = #tpu.pipeline_mode<synchronous>, transform_indices = @transform_3, window_bounds = array<i64: 1000, 500>}, {pipeline_mode = #tpu.pipeline_mode<synchronous>, transform_indices = @transform_4, window_bounds = array<i64: 1, 500>}, {pipeline_mode = #tpu.pipeline_mode<synchronous>, transform_indices = @transform_5, window_bounds = array<i64: 500, 64>}, {pipeline_mode = #tpu.pipeline_mode<synchronous>, transform_indices = @transform_6, window_bounds = array<i64: 1, 64>}, {pipeline_mode = #tpu.pipeline_mode<synchronous>, transform_indices = @transform_7, window_bounds = array<i64: 64, 4>}, {pipeline_mode = #tpu.pipeline_mode<synchronous>, transform_indices = @transform_8, window_bounds = array<i64: 1, 4>}, {transform_indices = @transform_9, window_bounds = array<i64: 8, 4>}]} {
    %c0 = arith.constant 0 : index
    %c0_0 = arith.constant 0 : index
    %0 = vector.load %arg1[%c0, %c0_0] : memref<8x24xf32, #tpu.memory_space<vmem>>, vector<8x24xf32>
    %c0_1 = arith.constant 0 : index
    %c0_2 = arith.constant 0 : index
    %1 = vector.load %arg2[%c0_1, %c0_2] : memref<24x1000xf32, #tpu.memory_space<vmem>>, vector<24x1000xf32>
    %cst = arith.constant dense<0.000000e+00> : vector<8x1000xf32>
    %2 = tpu.matmul %0, %1, %cst {dimension_numbers = #tpu.dot_dimension_numbers<[1], [0], [0], [1], [0, 0, 1, 1], [], []>} : vector<8x24xf32>, vector<24x1000xf32>, vector<8x1000xf32> -> vector<8x1000xf32>
    %c0_3 = arith.constant 0 : index
    %c0_4 = arith.constant 0 : index
    %3 = vector.load %arg3[%c0_3, %c0_4] : memref<1x1000xf32, #tpu.memory_space<vmem>>, vector<1x1000xf32>
    %4 = vector.broadcast %3 : vector<1x1000xf32> to vector<8x1000xf32>
    %5 = arith.addf %2, %4 : vector<8x1000xf32>
    %cst_5 = arith.constant 0.000000e+00 : f32
    %6 = vector.broadcast %cst_5 : f32 to vector<8x1000xf32>
    %7 = arith.maximumf %5, %6 : vector<8x1000xf32>
    %c0_6 = arith.constant 0 : index
    %c0_7 = arith.constant 0 : index
    %8 = vector.load %arg4[%c0_6, %c0_7] : memref<1000x500xf32, #tpu.memory_space<vmem>>, vector<1000x500xf32>
    %cst_8 = arith.constant dense<0.000000e+00> : vector<8x500xf32>
    %9 = tpu.matmul %7, %8, %cst_8 {dimension_numbers = #tpu.dot_dimension_numbers<[1], [0], [0], [1], [0, 0, 1, 1], [], []>} : vector<8x1000xf32>, vector<1000x500xf32>, vector<8x500xf32> -> vector<8x500xf32>
    %c0_9 = arith.constant 0 : index
    %c0_10 = arith.constant 0 : index
    %10 = vector.load %arg5[%c0_9, %c0_10] : memref<1x500xf32, #tpu.memory_space<vmem>>, vector<1x500xf32>
    %11 = vector.broadcast %10 : vector<1x500xf32> to vector<8x500xf32>
    %12 = arith.addf %9, %11 : vector<8x500xf32>
    %cst_11 = arith.constant 0.000000e+00 : f32
    %13 = vector.broadcast %cst_11 : f32 to vector<8x500xf32>
    %14 = arith.maximumf %12, %13 : vector<8x500xf32>
    %c0_12 = arith.constant 0 : index
    %c0_13 = arith.constant 0 : index
    %15 = vector.load %arg6[%c0_12, %c0_13] : memref<500x64xf32, #tpu.memory_space<vmem>>, vector<500x64xf32>
    %cst_14 = arith.constant dense<0.000000e+00> : vector<8x64xf32>
    %16 = tpu.matmul %14, %15, %cst_14 {dimension_numbers = #tpu.dot_dimension_numbers<[1], [0], [0], [1], [0, 0, 1, 1], [], []>} : vector<8x500xf32>, vector<500x64xf32>, vector<8x64xf32> -> vector<8x64xf32>
    %c0_15 = arith.constant 0 : index
    %c0_16 = arith.constant 0 : index
    %17 = vector.load %arg7[%c0_15, %c0_16] : memref<1x64xf32, #tpu.memory_space<vmem>>, vector<1x64xf32>
    %18 = vector.broadcast %17 : vector<1x64xf32> to vector<8x64xf32>
    %19 = arith.addf %16, %18 : vector<8x64xf32>
    %cst_17 = arith.constant 0.000000e+00 : f32
    %20 = vector.broadcast %cst_17 : f32 to vector<8x64xf32>
    %21 = arith.maximumf %19, %20 : vector<8x64xf32>
    %c0_18 = arith.constant 0 : index
    %c0_19 = arith.constant 0 : index
    %22 = vector.load %arg8[%c0_18, %c0_19] : memref<64x4xf32, #tpu.memory_space<vmem>>, vector<64x4xf32>
    %cst_20 = arith.constant dense<0.000000e+00> : vector<8x4xf32>
    %23 = tpu.matmul %21, %22, %cst_20 {dimension_numbers = #tpu.dot_dimension_numbers<[1], [0], [0], [1], [0, 0, 1, 1], [], []>} : vector<8x64xf32>, vector<64x4xf32>, vector<8x4xf32> -> vector<8x4xf32>
    %c0_21 = arith.constant 0 : index
    %c0_22 = arith.constant 0 : index
    %24 = vector.load %arg9[%c0_21, %c0_22] : memref<1x4xf32, #tpu.memory_space<vmem>>, vector<1x4xf32>
    %25 = vector.broadcast %24 : vector<1x4xf32> to vector<8x4xf32>
    %26 = arith.addf %23, %25 : vector<8x4xf32>
    %cst_23 = arith.constant 0.000000e+00 : f32
    %27 = vector.broadcast %cst_23 : f32 to vector<8x4xf32>
    %28 = arith.maximumf %26, %27 : vector<8x4xf32>
    %c0_24 = arith.constant 0 : index
    %c0_25 = arith.constant 0 : index
    %29 = vector.load %arg10[%c0_24, %c0_25] : memref<8x4xf32, #tpu.memory_space<vmem>>, vector<8x4xf32>
    tpu.vector_store %arg10[%c0_24, %c0_25], %28 {strides = array<i32>} : memref<8x4xf32, #tpu.memory_space<vmem>>, vector<8x4xf32>,
    return
  }
  func.func @transform_0(%arg0: i32) -> (i32, i32) {
    %c0_i32 = arith.constant 0 : i32
    %c0_i32_0 = arith.constant 0 : i32
    return %arg0, %c0_i32 : i32, i32
  }
  func.func @transform_1(%arg0: i32) -> (i32, i32) {
    %c0_i32 = arith.constant 0 : i32
    %c0_i32_0 = arith.constant 0 : i32
    %c0_i32_1 = arith.constant 0 : i32
    return %c0_i32, %c0_i32_0 : i32, i32
  }
  func.func @transform_2(%arg0: i32) -> (i32, i32) {
    %c0_i32 = arith.constant 0 : i32
    %c0_i32_0 = arith.constant 0 : i32
    %c0_i32_1 = arith.constant 0 : i32
    return %c0_i32, %c0_i32_0 : i32, i32
  }
  func.func @transform_3(%arg0: i32) -> (i32, i32) {
    %c0_i32 = arith.constant 0 : i32
    %c0_i32_0 = arith.constant 0 : i32
    %c0_i32_1 = arith.constant 0 : i32
    return %c0_i32, %c0_i32_0 : i32, i32
  }
  func.func @transform_4(%arg0: i32) -> (i32, i32) {
    %c0_i32 = arith.constant 0 : i32
    %c0_i32_0 = arith.constant 0 : i32
    %c0_i32_1 = arith.constant 0 : i32
    return %c0_i32, %c0_i32_0 : i32, i32
  }
  func.func @transform_5(%arg0: i32) -> (i32, i32) {
    %c0_i32 = arith.constant 0 : i32
    %c0_i32_0 = arith.constant 0 : i32
    %c0_i32_1 = arith.constant 0 : i32
    return %c0_i32, %c0_i32_0 : i32, i32
  }
  func.func @transform_6(%arg0: i32) -> (i32, i32) {
    %c0_i32 = arith.constant 0 : i32
    %c0_i32_0 = arith.constant 0 : i32
    %c0_i32_1 = arith.constant 0 : i32
    return %c0_i32, %c0_i32_0 : i32, i32
  }
  func.func @transform_7(%arg0: i32) -> (i32, i32) {
    %c0_i32 = arith.constant 0 : i32
    %c0_i32_0 = arith.constant 0 : i32
    %c0_i32_1 = arith.constant 0 : i32
    return %c0_i32, %c0_i32_0 : i32, i32
  }
  func.func @transform_8(%arg0: i32) -> (i32, i32) {
    %c0_i32 = arith.constant 0 : i32
    %c0_i32_0 = arith.constant 0 : i32
    %c0_i32_1 = arith.constant 0 : i32
    return %c0_i32, %c0_i32_0 : i32, i32
  }
  func.func @transform_9(%arg0: i32) -> (i32, i32) {
    %c0_i32 = arith.constant 0 : i32
    %c0_i32_0 = arith.constant 0 : i32
    return %arg0, %c0_i32 : i32, i32
  }
}

</mosaic_0001>

<bundles_post_ra>
// kernel: _lambda_.1
= control target key start
LH: loop header
LB: loop body
LE: loop exit
PB: predicated region body
PF: predicated region fallthrough
CT: control target
= control target key end

     0   :  { %14 = vsyncpa [#allocation3], 0  ;;  %s3183_s0 = inlined_call_operand.vmem [shape: f32[16,24], index: 0, kind: input, shape index: {}]   ;;  %s3184_s1 = inlined_call_operand.hbm [shape: f32[24,1000], index: 1, kind: input, shape index: {}]   ;;  %s3185_s2 = inlined_call_operand.hbm [shape: f32[1,1000], index: 2, kind: input, shape index: {}]   ;;  %s3186_s3 = inlined_call_operand.hbm [shape: f32[1000,500], index: 3, kind: input, shape index: {}]   ;;  %s3187_s4 = inlined_call_operand.hbm [shape: f32[1,500], index: 4, kind: input, shape index: {}]   ;;  %s3188_s5 = inlined_call_operand.vmem [shape: f32[500,64], index: 5, kind: input, shape index: {}]   ;;  %s3189_s6 = inlined_call_operand.hbm [shape: f32[1,64], index: 6, kind: input, shape index: {}]   ;;  %s3190_s7 = inlined_call_operand.vmem [shape: f32[64,4], index: 7, kind: input, shape index: {}]   ;;  %s3191_s8 = inlined_call_operand.hbm [shape: f32[1,4], index: 8, kind: input, shape index: {}]   ;;  %s3192_s9 = inlined_call_operand.vmem [shape: f32[16,4], index: 9, kind: output, shape index: {}]  }
   0x1   :  { %15 = vsyncpa [#allocation5], 0 }
   0x2   :  { %16 = vsyncpa [#allocation8], 0 }
   0x3   :  { %17 = vsyncpa [#allocation11], 0  ;;  %s2705_s30 = smov 0  }
   0x4 LB: > { %s2643_s10 = smov [#allocation4]   ;;  %s2711_s12 = sadd.s32 4294967295, %s2641_s30   ;;  %s2641_s30 = sphi %s2705_s30, %s23_s30  }
   0x5   : > { %s274_s11 = sshll.u32 %s2643_s10, 4  ;;  %p2295_p0 = scmp.ge.s32.totalorder %s2641_s30, 1  ;;  %s275_s11 = int_to_ptr.vmem [resolvable:$true] %s274_s11 }
   0x6   : > { %p248_p1 = scmp.lt.s32.totalorder %s2641_s30, 3  ;;  %p3193_p2 = scmp.eq.s32.totalorder %s2711_s12, 0 }
   0x7   : > { %s2644_s14 = smov [#allocation7]   ;;  %s2645_s16 = smov [#allocation2]  }
   0x8   : > { %p2716_p3 = pnand %p2295_p0, %p248_p1  ;;  %s298_s15 = sshll.u32 %s2644_s14, 4  ;;  %s299_s15 = int_to_ptr.vmem [resolvable:$true] %s298_s15 }
   0x9   : > { %s260_s17 = sshll.u32 %s2645_s16, 4  ;;  %s2646_s19 = smov [#allocation6]   ;;  %s2728_s17 = int_to_ptr.vmem [resolvable:$true] %s260_s17 }
   0xa   : > { %s3195_s13 = scalar_select %p2716_p3, 1, 0 }
   0xb   : > { %p2412_p4 = pneg %p2716_p3  ;;  %s2730_s20 = sshll.u32 %s2646_s19, 4  ;;  %s285_s20 = int_to_ptr.vmem [resolvable:$true] %s2730_s20 }
   0xc   : > { %s2474_s22 = scalar_lea.vmem %s275_s11, 128  ;;  %p2482_p10 = scmp.lt.s32.totalorder %s275_s11, %s275_s11 }
   0xd   : > { %p2724_p5 = pnand %p3193_p2, %p2412_p4  ;;  %p2475_p7 = scmp.ne.s32.totalorder %s275_s11, %s2474_s22 }
   0xe   : > { %p2483_p11 = scmp.lt.s32.totalorder %s2474_s22, %s2474_s22 }
   0xf   : > { %p2734_p6 = pneg %p2724_p5 }
  0x10   : > { %p2484_p12 = por %p2483_p11, %p2482_p10 }
  0x11   : > { %p2477_p8 = pnand %p2475_p7, %p2734_p6 }
  0x13   : > { %p2478_p9 = pneg %p2477_p8 }
  0x15   : > { %p2485_p13 = pnand %p2484_p12, %p2478_p9 }
  0x17   : > { %2488 = shalt.err (!%p2485_p13)
}
  0x18   : > { %2418 = dma.hbm_to_vmem [thread:$0]  (!%p2724_p5), %s3185_s2, 128, %s275_s11, [#allocation5]  }
  0x19   : > { %s2500_s25 = scalar_lea.vmem %s299_s15, 64  ;;  %p2508_p2 = scmp.lt.s32.totalorder %s299_s15, %s299_s15 }
  0x1a   : > { %p2501_p0 = scmp.ne.s32.totalorder %s299_s15, %s2500_s25  ;;  %p2509_p7 = scmp.lt.s32.totalorder %s2500_s25, %s2500_s25 }
  0x1c   : > { %p2503_p1 = pnand %p2501_p0, %p2734_p6  ;;  %p2510_p8 = por %p2509_p7, %p2508_p2 }
  0x1e   : > { %p2504_p4 = pneg %p2503_p1 }
  0x20   : > { %p2511_p3 = pnand %p2510_p8, %p2504_p4 }
  0x22   : > { %2514 = shalt.err (!%p2511_p3)
}
  0x23   : > { %2424 = dma.hbm_to_vmem [thread:$0]  (!%p2724_p5), %s3187_s4, 64, %s299_s15, [#allocation8]  }
  0x24   : > { %s2526_s28 = scalar_lea.vmem %s2728_s17, 3072  ;;  %p2534_p12 = scmp.lt.s32.totalorder %s2728_s17, %s2728_s17 }
  0x25   : > { %p2527_p9 = scmp.ne.s32.totalorder %s2728_s17, %s2526_s28  ;;  %p2535_p2 = scmp.lt.s32.totalorder %s2526_s28, %s2526_s28 }
  0x27   : > { %p2529_p10 = pnand %p2527_p9, %p2734_p6  ;;  %p2536_p13 = por %p2535_p2, %p2534_p12 }
  0x29   : > { %p2530_p11 = pneg %p2529_p10 }
  0x2b   : > { %p2537_p3 = pnand %p2536_p13, %p2530_p11 }
  0x2d   : > { %2540 = shalt.err (!%p2537_p3)
}
  0x2e   : > { %s2647_s29 = smov 1024   ;;  %s2648_s10 = smov 64  }
  0x2f   : > { %2415 = dma.hbm_to_vmem [thread:$0]  (!%p2724_p5), %s3184_s1, 3072, %s2728_s17, [#allocation3], %s2647_s29, %s2647_s29, %s2648_s10  }
  0x30   : > { %s2552_s15 = scalar_lea.vmem %s285_s20, 64000  ;;  %p2560_p7 = scmp.lt.s32.totalorder %s285_s20, %s285_s20 }
  0x31   : > { %p2553_p0 = scmp.ne.s32.totalorder %s285_s20, %s2552_s15  ;;  %p2561_p8 = scmp.lt.s32.totalorder %s2552_s15, %s2552_s15 }
  0x33   : > { %p2555_p1 = pnand %p2553_p0, %p2734_p6  ;;  %p2562_p9 = por %p2561_p8, %p2560_p7 }
  0x35   : > { %p2556_p4 = pneg %p2555_p1 }
  0x37   : > { %p2563_p10 = pnand %p2562_p9, %p2556_p4 }
  0x39   : > { %2566 = shalt.err (!%p2563_p10)
}
  0x3a   : > { %s2649_s16 = smov 512   ;;  %s2650_s19 = smov 32  }
  0x3b   : > { %2421 = dma.hbm_to_vmem [thread:$0]  (!%p2724_p5), %s3186_s3, 64000, %s285_s20, [#allocation5], %s2649_s16, %s2649_s16, %s2650_s19  }
  0x3c   : > { %s2651_s17 = smov [#allocation9]   ;;  %s2652_s25 = smov [#allocation10]  }
  0x3d   : > { %s312_s24 = sshll.u32 %s2651_s17, 4  ;;  %s326_s26 = sshll.u32 %s2652_s25, 4  ;;  %s313_s24 = int_to_ptr.vmem [resolvable:$true] %s312_s24  ;;  %s327_s26 = int_to_ptr.vmem [resolvable:$true] %s326_s26 }
  0x3e   : > { %s2578_s27 = scalar_lea.vmem %s313_s24, 16  ;;  %s2585_s28 = scalar_lea.vmem %s313_s24, 32 }
  0x3f   : > { %p2579_p11 = scmp.ne.s32.totalorder %s313_s24, %s2578_s27  ;;  %p2586_p13 = scmp.lt.s32.totalorder %s313_s24, %s313_s24 }
  0x40   : > { %p2587_p3 = scmp.lt.s32.totalorder %s2585_s28, %s2578_s27 }
  0x41   : > { %p2581_p12 = pnand %p2579_p11, %p2734_p6 }
  0x42   : > { %p2588_p0 = por %p2587_p3, %p2586_p13 }
  0x43   : > { %p2582_p2 = pneg %p2581_p12 }
  0x45   : > { %p2589_p1 = pnand %p2588_p0, %p2582_p2 }
  0x47   : > { %2592 = shalt.err (!%p2589_p1)
}
  0x48   : > { %2427 = dma.hbm_to_vmem [thread:$0]  (!%p2724_p5), %s3189_s6, 16, %s313_s24, [#allocation8]  }
  0x49   : > { %s2604_s10 = scalar_lea.vmem %s327_s26, 16  ;;  %s2611_s11 = scalar_lea.vmem %s327_s26, 32 }
  0x4a   : > { %p2605_p4 = scmp.ne.s32.totalorder %s327_s26, %s2604_s10  ;;  %p2612_p9 = scmp.lt.s32.totalorder %s327_s26, %s327_s26 }
  0x4b   : > { %p2613_p10 = scmp.lt.s32.totalorder %s2611_s11, %s2604_s10 }
  0x4c   : > { %p2607_p7 = pnand %p2605_p4, %p2734_p6 }
  0x4d   : > { %p2614_p11 = por %p2613_p10, %p2612_p9 }
  0x4e   : > { %p2608_p8 = pneg %p2607_p7 }
  0x50   : > { %p2615_p12 = pnand %p2614_p11, %p2608_p8 }
  0x52   : > { %2618 = shalt.err (!%p2615_p12)
}
  0x53   : > { %2430 = dma.hbm_to_vmem [thread:$0]  (!%p2724_p5), %s3191_s8, 16, %s327_s26, [#allocation11]  }
  0x54   : > { %p3198_p2 = scmp.ne.s32.totalorder %s3195_s13, 0 }
  0x55   : > { %p3199_p13 = scmp.eq.s32.totalorder (!%p3198_p2), %s2711_s12, 0 }
  0x56   : > { %346 = sbr.rel (%p3198_p2) target bundleno = 1105 (0x451), region = 56 }
  0x5b   : > { %2624 = dma.done.wait (%p3199_p13), [#allocation3], 3072   ;;  %p3200_p6 = pmov %p3199_p13 }
  0x5d   : > { %2626 = vsyncadd (%p3200_p6), [#allocation3], 4294964224  ;;  %p3201_p3 = pmov %p3200_p6 }
  0x5f   : > { %2628 = dma.done.wait (%p3201_p3), [#allocation5], 64128   ;;  %p3202_p0 = pmov %p3201_p3 }
  0x61   : > { %2630 = vsyncadd (%p3202_p0), [#allocation5], 4294903168  ;;  %p3203_p1 = pmov %p3202_p0 }
  0x62   : > { %p3204_p5 = pmov %p3202_p0 }
  0x63   : > { %2632 = dma.done.wait (%p3203_p1), [#allocation8], 80  }
  0x64   : > { %2634 = vsyncadd (%p3204_p5), [#allocation8], 4294967216  ;;  %p3205_p4 = pmov %p3202_p0 }
  0x65   : > { %p3206_p7 = pmov %p3202_p0 }
  0x66   : > { %2636 = dma.done.wait (%p3205_p4), [#allocation11], 16  }
  0x67   : > { %2638 = vsyncadd (%p3206_p7), [#allocation11], 4294967280  ;;  %p400_p8 = scmp.lt.s32.totalorder %s2711_s12, 1  ;;  %v2653_v0 = vmov 0.0   ;;  %v426_v1 = vld [vmem:[#allocation2 + $0x88] sm:$0xff]  ;;  %v425_v2 = vld [vmem:[#allocation2 + $0x80] sm:$0xff] }
  0x68   : > { %543 = vmatprep.mubr.f32.mxu0 %v2653_v0  ;;  %756 = vmatprep.mubr.f32.mxu1 %v2653_v0  ;;  %v418_v3 = vld [vmem:[#allocation2 + $0x48] sm:$0xff]  ;;  %v417_v4 = vld [vmem:[#allocation2 + $0x40] sm:$0xff]  ;;  %vm475_vm0 = vcmask 195584   ;;  %v428_v8 = vld [vmem:[#allocation2 + $0x98] sm:$0xff]  ;;  %vm1293_vm1 = vcmask 850944   ;;  %vm1943_vm2 = vcmask 1043456  }
  0x69   : > { %s3208_s12 = smov (!%p400_p8, %s2711_s12), 1  ;;  %505 = vmatprep.subr.mxu0 %v426_v1  ;;  %v410_v5 = vld [vmem:[#allocation2 + $0x8] sm:$0xff]  ;;  %v409_v6 = vld [vmem:[#allocation2] sm:$0xff]  ;;  %v432_v9 = vld [vmem:[#allocation2 + $0xb8] sm:$0xff]  ;;  %vm1939_vm3 = vcmask 949248   ;;  %vm2654_vm4 = vmmov 0  }
  0x6a   : > { %s2310_s13 = sshll.u32 %s3208_s12, 3  ;;  %506 = vmatpush1.msra.mxu0 %v425_v2  ;;  %v427_v10 = vld [vmem:[#allocation2 + $0x90] sm:$0xff]  ;;  %718 = vmatprep.subr.mxu1 %v432_v9  ;;  %v420_v12 = vld [vmem:[#allocation2 + $0x58] sm:$0xff]  ;;  %v430_v20 = vld [vmem:[#allocation2 + $0xa8] sm:$0xff]  ;;  %vm2103_vm5 = vcmask 523264   ;;  %vm2178_vm6 = vcmask 31744  }
  0x6b   : > { %s403_s16 = scalar_lea.vmem %s3183_s0, %s2310_s13  ;;  %507 = vmatprep.subr.mxu0 %v418_v3  ;;  %v431_v11 = vld [vmem:[#allocation2 + $0xb0] sm:$0xff]  ;;  %v424_v13 = vld [vmem:[#allocation2 + $0x78] sm:$0xff]  ;;  %v429_v21 = vld [vmem:[#allocation2 + $0xa0] sm:$0xff]  ;;  %s407_s19 = scalar_lea.vmem %s3192_s9, %s2310_s13 }
  0x6c   : > { %508 = vmatpush1.msra.mxu0 %v417_v4  ;;  %v408_v7 = vld [vmem:[%s403_s16] sm:$0xff]  ;;  %719 = vmatpush1.msra.mxu1 %v431_v11  ;;  %v419_v14 = vld [vmem:[#allocation2 + $0x50] sm:$0xff]  ;;  %v412_v16 = vld [vmem:[#allocation2 + $0x18] sm:$0xff] }
  0x6d   : > { %509 = vmatprep.subr.mxu0 %v410_v5  ;;  %v423_v15 = vld [vmem:[#allocation2 + $0x70] sm:$0xff]  ;;  %v416_v17 = vld [vmem:[#allocation2 + $0x38] sm:$0xff]  ;;  %720 = vmatprep.subr.mxu1 %v424_v13  ;;  %v422_v22 = vld [vmem:[#allocation2 + $0x68] sm:$0xff] }
  0x6e   : > { %510 = vmatpush1.msra.mxu0 %v409_v6  ;;  %v411_v18 = vld [vmem:[#allocation2 + $0x10] sm:$0xff]  ;;  %721 = vmatpush1.msra.mxu1 %v423_v15  ;;  %v421_v23 = vld [vmem:[#allocation2 + $0x60] sm:$0xff]  ;;  %v414_v25 = vld [vmem:[#allocation2 + $0x28] sm:$0xff] }
  0x6f   : > { %2312 = vmatmul.mubr.msk.f32.vlgmr.msra.gmra.mxu0 %vm475_vm0, %v408_v7  ;;  %576 = vmatprep.subr.mxu0 %v428_v8  ;;  %v415_v19 = vld [vmem:[#allocation2 + $0x30] sm:$0xff]  ;;  %v959_v26 = vld [vmem:[#allocation6 + $0x5e0] sm:$0xff]  ;;  %v413_v27 = vld [vmem:[#allocation2 + $0x20] sm:$0xff] }
  0x70   : > { %577 = vmatpush1.msra.mxu0 %v427_v10  ;;  %614 = vmatprep.mubr.f32.mxu0 %v2653_v0  ;;  %v960_v24 = vld [vmem:[#allocation6 + $0x5e8] sm:$0xff]  ;;  %v831_v30 = vld [vmem:[#allocation6 + $0x1e0] sm:$0xff] }
  0x71   : > { %578 = vmatprep.subr.mxu0 %v420_v12  ;;  %722 = vmatprep.subr.mxu1 %v416_v17  ;;  %v956_v28 = vld [vmem:[#allocation6 + $0x5c8] sm:$0xff]  ;;  %v955_v31 = vld [vmem:[#allocation6 + $0x5c0] sm:$0xff] }
  0x72   : > { %579 = vmatpush1.msra.mxu0 %v419_v14  ;;  %723 = vmatpush1.msra.mxu1 %v415_v19  ;;  %v832_v29 = vld [vmem:[#allocation6 + $0x1e8] sm:$0xff]  ;;  %v827_v34 = vld [vmem:[#allocation6 + $0x1c0] sm:$0xff] }
  0x73   : > { %580 = vmatprep.subr.mxu0 %v412_v16  ;;  %2315 = vmatmul.mubr.msk.f32.vlgmr.msra.gmra.mxu1 %vm475_vm0, %v408_v7  ;;  %v828_v32 = vld [vmem:[#allocation6 + $0x1c8] sm:$0xff]  ;;  %v951_v35 = vld [vmem:[#allocation6 + $0x5a0] sm:$0xff] }
  0x74   : > { %581 = vmatpush1.msra.mxu0 %v411_v18  ;;  %1368 = vmatprep.subr.mxu1 %v960_v24  ;;  %v952_v33 = vld [vmem:[#allocation6 + $0x5a8] sm:$0xff]  ;;  %v823_v38 = vld [vmem:[#allocation6 + $0x1a0] sm:$0xff] }
  0x75   : > { %2313 = vmatmul.mubr.msk.f32.vlgmr.msra.gmra.mxu0 %vm475_vm0, %v408_v7  ;;  %647 = vmatprep.subr.mxu0 %v430_v20  ;;  %v824_v36 = vld [vmem:[#allocation6 + $0x1a8] sm:$0xff]  ;;  %v947_v39 = vld [vmem:[#allocation6 + $0x580] sm:$0xff] }
  0x76   : > { %648 = vmatpush1.msra.mxu0 %v429_v21  ;;  %685 = vmatprep.mubr.f32.mxu0 %v2653_v0  ;;  %v948_v37 = vld [vmem:[#allocation6 + $0x588] sm:$0xff]  ;;  %v819_v42 = vld [vmem:[#allocation6 + $0x180] sm:$0xff] }
  0x77   : > { %649 = vmatprep.subr.mxu0 %v422_v22  ;;  %1369 = vmatpush1.msra.mxu1 %v959_v26  ;;  %v820_v40 = vld [vmem:[#allocation6 + $0x188] sm:$0xff]  ;;  %v943_v43 = vld [vmem:[#allocation6 + $0x560] sm:$0xff] }
  0x78   : > { %650 = vmatpush1.msra.mxu0 %v421_v23  ;;  %1370 = vmatprep.subr.mxu1 %v956_v28  ;;  %v944_v41 = vld [vmem:[#allocation6 + $0x568] sm:$0xff]  ;;  %v815_v46 = vld [vmem:[#allocation6 + $0x160] sm:$0xff] }
  0x79   : > { %651 = vmatprep.subr.mxu0 %v414_v25  ;;  %1371 = vmatpush1.msra.mxu1 %v955_v31  ;;  %v816_v44 = vld [vmem:[#allocation6 + $0x168] sm:$0xff]  ;;  %v939_v47 = vld [vmem:[#allocation6 + $0x540] sm:$0xff] }
  0x7a   : > { %652 = vmatpush1.msra.mxu0 %v413_v27  ;;  %1372 = vmatprep.subr.mxu1 %v952_v33  ;;  %v940_v45 = vld [vmem:[#allocation6 + $0x548] sm:$0xff]  ;;  %v811_v50 = vld [vmem:[#allocation6 + $0x140] sm:$0xff] }
  0x7b   : > { %2314 = vmatmul.mubr.msk.f32.vlgmr.msra.gmra.mxu0 %vm475_vm0, %v408_v7  ;;  %1297 = vmatprep.subr.mxu0 %v832_v29  ;;  %v812_v48 = vld [vmem:[#allocation6 + $0x148] sm:$0xff]  ;;  %v935_v51 = vld [vmem:[#allocation6 + $0x520] sm:$0xff] }
  0x7c   : > { %1298 = vmatpush1.msra.mxu0 %v831_v30  ;;  %1373 = vmatpush1.msra.mxu1 %v951_v35  ;;  %v936_v49 = vld [vmem:[#allocation6 + $0x528] sm:$0xff]  ;;  %v807_v54 = vld [vmem:[#allocation6 + $0x120] sm:$0xff] }
  0x7d   : > { %1299 = vmatprep.subr.mxu0 %v828_v32  ;;  %1374 = vmatprep.subr.mxu1 %v948_v37  ;;  %v808_v52 = vld [vmem:[#allocation6 + $0x128] sm:$0xff]  ;;  %v931_v55 = vld [vmem:[#allocation6 + $0x500] sm:$0xff] }
  0x7e   : > { %1300 = vmatpush1.msra.mxu0 %v827_v34  ;;  %1375 = vmatpush1.msra.mxu1 %v947_v39  ;;  %v932_v53 = vld [vmem:[#allocation6 + $0x508] sm:$0xff]  ;;  %v803_v58 = vld [vmem:[#allocation6 + $0x100] sm:$0xff] }
  0x7f   : > { %1301 = vmatprep.subr.mxu0 %v824_v36  ;;  %1376 = vmatprep.subr.mxu1 %v944_v41  ;;  %v804_v56 = vld [vmem:[#allocation6 + $0x108] sm:$0xff]  ;;  %v927_v59 = vld [vmem:[#allocation6 + $0x4e0] sm:$0xff] }
  0x80   : > { %1302 = vmatpush1.msra.mxu0 %v823_v38  ;;  %1377 = vmatpush1.msra.mxu1 %v943_v43  ;;  %v928_v57 = vld [vmem:[#allocation6 + $0x4e8] sm:$0xff]  ;;  %v799_v62 = vld [vmem:[#allocation6 + $0xe0] sm:$0xff] }
  0x81   : > { %1303 = vmatprep.subr.mxu0 %v820_v40  ;;  %1378 = vmatprep.subr.mxu1 %v940_v45  ;;  %v800_v60 = vld [vmem:[#allocation6 + $0xe8] sm:$0xff]  ;;  %v923_v63 = vld [vmem:[#allocation6 + $0x4c0] sm:$0xff] }
  0x82   : > { %1304 = vmatpush1.msra.mxu0 %v819_v42  ;;  %1379 = vmatpush1.msra.mxu1 %v939_v47  ;;  %v924_v61 = vld [vmem:[#allocation6 + $0x4c8] sm:$0xff]  ;;  %v795_v3 = vld [vmem:[#allocation6 + $0xc0] sm:$0xff] }
  0x83   : > { %1305 = vmatprep.subr.mxu0 %v816_v44  ;;  %1380 = vmatprep.subr.mxu1 %v936_v49  ;;  %v796_v1 = vld [vmem:[#allocation6 + $0xc8] sm:$0xff]  ;;  %v919_v4 = vld [vmem:[#allocation6 + $0x4a0] sm:$0xff] }
  0x84   : > { %1306 = vmatpush1.msra.mxu0 %v815_v46  ;;  %1381 = vmatpush1.msra.mxu1 %v935_v51  ;;  %v920_v2 = vld [vmem:[#allocation6 + $0x4a8] sm:$0xff]  ;;  %v791_v7 = vld [vmem:[#allocation6 + $0xa0] sm:$0xff] }
  0x85   : > { %1307 = vmatprep.subr.mxu0 %v812_v48  ;;  %1382 = vmatprep.subr.mxu1 %v932_v53  ;;  %v792_v5 = vld [vmem:[#allocation6 + $0xa8] sm:$0xff]  ;;  %v915_v8 = vld [vmem:[#allocation6 + $0x480] sm:$0xff] }
  0x86   : > { %1308 = vmatpush1.msra.mxu0 %v811_v50  ;;  %1383 = vmatpush1.msra.mxu1 %v931_v55  ;;  %v916_v6 = vld [vmem:[#allocation6 + $0x488] sm:$0xff]  ;;  %v787_v11 = vld [vmem:[#allocation6 + $0x80] sm:$0xff] }
  0x87   : > { %1309 = vmatprep.subr.mxu0 %v808_v52  ;;  %1384 = vmatprep.subr.mxu1 %v928_v57  ;;  %v788_v9 = vld [vmem:[#allocation6 + $0x88] sm:$0xff]  ;;  %v911_v12 = vld [vmem:[#allocation6 + $0x460] sm:$0xff] }
  0x88   : > { %1310 = vmatpush1.msra.mxu0 %v807_v54  ;;  %1385 = vmatpush1.msra.mxu1 %v927_v59  ;;  %v912_v10 = vld [vmem:[#allocation6 + $0x468] sm:$0xff]  ;;  %v783_v15 = vld [vmem:[#allocation6 + $0x60] sm:$0xff] }
  0x89   : > { %1311 = vmatprep.subr.mxu0 %v804_v56  ;;  %1386 = vmatprep.subr.mxu1 %v924_v61  ;;  %v784_v13 = vld [vmem:[#allocation6 + $0x68] sm:$0xff]  ;;  %v907_v16 = vld [vmem:[#allocation6 + $0x440] sm:$0xff] }
  0x8a   : > { %1312 = vmatpush1.msra.mxu0 %v803_v58  ;;  %1387 = vmatpush1.msra.mxu1 %v923_v63  ;;  %v908_v14 = vld [vmem:[#allocation6 + $0x448] sm:$0xff]  ;;  %v779_v19 = vld [vmem:[#allocation6 + $0x40] sm:$0xff] }
  0x8b   : > { %1313 = vmatprep.subr.mxu0 %v800_v60  ;;  %1388 = vmatprep.subr.mxu1 %v920_v2  ;;  %v780_v17 = vld [vmem:[#allocation6 + $0x48] sm:$0xff]  ;;  %v903_v20 = vld [vmem:[#allocation6 + $0x420] sm:$0xff] }
  0x8c   : > { %1314 = vmatpush1.msra.mxu0 %v799_v62  ;;  %1389 = vmatpush1.msra.mxu1 %v919_v4  ;;  %v904_v18 = vld [vmem:[#allocation6 + $0x428] sm:$0xff]  ;;  %v775_v23 = vld [vmem:[#allocation6 + $0x20] sm:$0xff] }
  0x8d   : > { %1315 = vmatprep.subr.mxu0 %v796_v1  ;;  %1390 = vmatprep.subr.mxu1 %v916_v6  ;;  %v776_v21 = vld [vmem:[#allocation6 + $0x28] sm:$0xff]  ;;  %v899_v24 = vld [vmem:[#allocation6 + $0x400] sm:$0xff] }
  0x8e   : > { %1316 = vmatpush1.msra.mxu0 %v795_v3  ;;  %1391 = vmatpush1.msra.mxu1 %v915_v8  ;;  %v900_v22 = vld [vmem:[#allocation6 + $0x408] sm:$0xff]  ;;  %v771_v27 = vld [vmem:[#allocation6] sm:$0xff] }
  0x8f   : > { %1317 = vmatprep.subr.mxu0 %v792_v5  ;;  %1392 = vmatprep.subr.mxu1 %v912_v10  ;;  %v772_v25 = vld [vmem:[#allocation6 + $0x8] sm:$0xff]  ;;  %v1023_v28 = vld [vmem:[#allocation6 + $0x7e0] sm:$0xff] }
  0x90   : > { %1318 = vmatpush1.msra.mxu0 %v791_v7  ;;  %1393 = vmatpush1.msra.mxu1 %v911_v12  ;;  %v1024_v26 = vld [vmem:[#allocation6 + $0x7e8] sm:$0xff]  ;;  %v895_v31 = vld [vmem:[#allocation6 + $0x3e0] sm:$0xff] }
  0x91   : > { %1319 = vmatprep.subr.mxu0 %v788_v9  ;;  %1394 = vmatprep.subr.mxu1 %v908_v14  ;;  %v896_v29 = vld [vmem:[#allocation6 + $0x3e8] sm:$0xff]  ;;  %v1019_v32 = vld [vmem:[#allocation6 + $0x7c0] sm:$0xff] }
  0x92   : > { %1320 = vmatpush1.msra.mxu0 %v787_v11  ;;  %1395 = vmatpush1.msra.mxu1 %v907_v16  ;;  %v1020_v30 = vld [vmem:[#allocation6 + $0x7c8] sm:$0xff]  ;;  %v891_v35 = vld [vmem:[#allocation6 + $0x3c0] sm:$0xff] }
  0x93   : > { %1321 = vmatprep.subr.mxu0 %v784_v13  ;;  %1396 = vmatprep.subr.mxu1 %v904_v18  ;;  %v892_v33 = vld [vmem:[#allocation6 + $0x3c8] sm:$0xff]  ;;  %v1015_v36 = vld [vmem:[#allocation6 + $0x7a0] sm:$0xff] }
  0x94   : > { %1322 = vmatpush1.msra.mxu0 %v783_v15  ;;  %1397 = vmatpush1.msra.mxu1 %v903_v20  ;;  %v1016_v34 = vld [vmem:[#allocation6 + $0x7a8] sm:$0xff]  ;;  %v887_v39 = vld [vmem:[#allocation6 + $0x3a0] sm:$0xff] }
  0x95   : > { %1323 = vmatprep.subr.mxu0 %v780_v17  ;;  %1398 = vmatprep.subr.mxu1 %v900_v22  ;;  %v888_v37 = vld [vmem:[#allocation6 + $0x3a8] sm:$0xff]  ;;  %v1011_v40 = vld [vmem:[#allocation6 + $0x780] sm:$0xff] }
  0x96   : > { %1324 = vmatpush1.msra.mxu0 %v779_v19  ;;  %1399 = vmatpush1.msra.mxu1 %v899_v24  ;;  %v1012_v38 = vld [vmem:[#allocation6 + $0x788] sm:$0xff]  ;;  %v883_v43 = vld [vmem:[#allocation6 + $0x380] sm:$0xff] }
  0x97   : > { %1325 = vmatprep.subr.mxu0 %v776_v21  ;;  %1400 = vmatprep.subr.mxu1 %v1024_v26  ;;  %v884_v41 = vld [vmem:[#allocation6 + $0x388] sm:$0xff]  ;;  %v1007_v44 = vld [vmem:[#allocation6 + $0x760] sm:$0xff] }
  0x98   : > { %1326 = vmatpush1.msra.mxu0 %v775_v23  ;;  %1401 = vmatpush2.msra.mxu1 %v1023_v28  ;;  %v1008_v42 = vld [vmem:[#allocation6 + $0x768] sm:$0xff]  ;;  %v879_v47 = vld [vmem:[#allocation6 + $0x360] sm:$0xff] }
  0x99   : > { %1327 = vmatprep.subr.mxu0 %v772_v25  ;;  %1402 = vmatprep.subr.mxu1 %v1020_v30  ;;  %v880_v45 = vld [vmem:[#allocation6 + $0x368] sm:$0xff]  ;;  %v1003_v48 = vld [vmem:[#allocation6 + $0x740] sm:$0xff]  ;;  %v435_v30 = vlaneseq }
  0x9a   : > { %1328 = vmatpush1.msra.mxu0 %v771_v27  ;;  %1403 = vmatpush2.msra.mxu1 %v1019_v32  ;;  %v1004_v46 = vld [vmem:[#allocation6 + $0x748] sm:$0xff]  ;;  %v875_v51 = vld [vmem:[#allocation6 + $0x340] sm:$0xff] }
  0x9b   : > { %1329 = vmatprep.subr.mxu0 %v896_v29  ;;  %1404 = vmatprep.subr.mxu1 %v1016_v34  ;;  %v876_v49 = vld [vmem:[#allocation6 + $0x348] sm:$0xff]  ;;  %v999_v52 = vld [vmem:[#allocation6 + $0x720] sm:$0xff] }
  0x9c   : > { %1330 = vmatpush2.msra.mxu0 %v895_v31  ;;  %1405 = vmatpush2.msra.mxu1 %v1015_v36  ;;  %v1000_v50 = vld [vmem:[#allocation6 + $0x728] sm:$0xff]  ;;  %v871_v55 = vld [vmem:[#allocation6 + $0x320] sm:$0xff]  ;;  %v2822_v31 = vshrl.u32 %v435_v30, 7 }
  0x9d   : > { %1331 = vmatprep.subr.mxu0 %v892_v33  ;;  %1406 = vmatprep.subr.mxu1 %v1012_v38  ;;  %v872_v53 = vld [vmem:[#allocation6 + $0x328] sm:$0xff]  ;;  %v995_v56 = vld [vmem:[#allocation6 + $0x700] sm:$0xff]  ;;  %v2825_v33 = vld [vmem:[#allocation4] sm:$0xff] }
  0x9e   : > { %1332 = vmatpush2.msra.mxu0 %v891_v35  ;;  %1407 = vmatpush2.msra.mxu1 %v1011_v40  ;;  %v996_v54 = vld [vmem:[#allocation6 + $0x708] sm:$0xff]  ;;  %v867_v59 = vld [vmem:[#allocation6 + $0x300] sm:$0xff]  ;;  %v437_v32 = vsub.s32 0, %v2822_v31  ;;  %v441_v34 = vsub.s32 1, %v2822_v31  ;;  %v445_v38 = vsub.s32 2, %v2822_v31 }
  0x9f   : > { %1333 = vmatprep.subr.mxu0 %v888_v37  ;;  %1408 = vmatprep.subr.mxu1 %v1008_v42  ;;  %v868_v57 = vld [vmem:[#allocation6 + $0x308] sm:$0xff]  ;;  %v991_v60 = vld [vmem:[#allocation6 + $0x6e0] sm:$0xff] }
  0xa0   : > { %1334 = vmatpush2.msra.mxu0 %v887_v39  ;;  %1409 = vmatpush2.msra.mxu1 %v1007_v44  ;;  %v992_v58 = vld [vmem:[#allocation6 + $0x6e8] sm:$0xff]  ;;  %v863_v63 = vld [vmem:[#allocation6 + $0x2e0] sm:$0xff]  ;;  %v438_v35 = vrot.slane %v2825_v33, %v437_v32  ;;  %v442_v36 = vrot.slane %v2825_v33, %v441_v34  ;;  %v449_v39 = vsub.s32 3, %v2822_v31 }
  0xa1   : > { %1335 = vmatprep.subr.mxu0 %v884_v41  ;;  %1410 = vmatprep.subr.mxu1 %v1004_v46  ;;  %v864_v61 = vld [vmem:[#allocation6 + $0x2e8] sm:$0xff]  ;;  %v859_v2 = vld [vmem:[#allocation6 + $0x2c0] sm:$0xff] }
  0xa2   : > { %1336 = vmatpush2.msra.mxu0 %v883_v43  ;;  %1411 = vmatpush2.msra.mxu1 %v1003_v48  ;;  %v988_v62 = vld [vmem:[#allocation6 + $0x6c8] sm:$0xff]  ;;  %v855_v4 = vld [vmem:[#allocation6 + $0x2a0] sm:$0xff]  ;;  %v446_v43 = vrot.slane %v2825_v33, %v445_v38 }
  0xa3   : > { %1337 = vmatprep.subr.mxu0 %v880_v45  ;;  %1412 = vmatprep.subr.mxu1 %v1000_v50  ;;  %v860_v1 = vld [vmem:[#allocation6 + $0x2c8] sm:$0xff]  ;;  %v987_v6 = vld [vmem:[#allocation6 + $0x6c0] sm:$0xff]  ;;  %v450_v45 = vrot.slane %v2825_v33, %v449_v39 }
  0xa4   : > { %1338 = vmatpush2.msra.mxu0 %v879_v47  ;;  %1413 = vmatpush2.msra.mxu1 %v999_v52  ;;  %v856_v3 = vld [vmem:[#allocation6 + $0x2a8] sm:$0xff]  ;;  %v851_v7 = vld [vmem:[#allocation6 + $0x280] sm:$0xff] }
  0xa5   : > { %1339 = vmatprep.subr.mxu0 %v876_v49  ;;  %1414 = vmatprep.subr.mxu1 %v996_v54  ;;  %v852_v5 = vld [vmem:[#allocation6 + $0x288] sm:$0xff]  ;;  %v983_v10 = vld [vmem:[#allocation6 + $0x6a0] sm:$0xff] }
  0xa6   : > { %1340 = vmatpush2.msra.mxu0 %v875_v51  ;;  %1415 = vmatpush2.msra.mxu1 %v995_v56  ;;  %v984_v8 = vld [vmem:[#allocation6 + $0x6a8] sm:$0xff]  ;;  %v847_v11 = vld [vmem:[#allocation6 + $0x260] sm:$0xff] }
  0xa7   : > { %1341 = vmatprep.subr.mxu0 %v872_v53  ;;  %1416 = vmatprep.subr.mxu1 %v992_v58  ;;  %v848_v9 = vld [vmem:[#allocation6 + $0x268] sm:$0xff]  ;;  %v979_v14 = vld [vmem:[#allocation6 + $0x680] sm:$0xff] }
  0xa8   : > { %1342 = vmatpush2.msra.mxu0 %v871_v55  ;;  %1417 = vmatpush2.msra.mxu1 %v991_v60  ;;  %v980_v12 = vld [vmem:[#allocation6 + $0x688] sm:$0xff]  ;;  %v843_v15 = vld [vmem:[#allocation6 + $0x240] sm:$0xff] }
  0xa9   : > { %1343 = vmatprep.subr.mxu0 %v868_v57  ;;  %1418 = vmatprep.subr.mxu1 %v988_v62  ;;  %v844_v13 = vld [vmem:[#allocation6 + $0x248] sm:$0xff]  ;;  %v975_v18 = vld [vmem:[#allocation6 + $0x660] sm:$0xff] }
  0xaa   : > { %1344 = vmatpush2.msra.mxu0 %v867_v59  ;;  %1419 = vmatpush2.msra.mxu1 %v987_v6  ;;  %v976_v16 = vld [vmem:[#allocation6 + $0x668] sm:$0xff]  ;;  %v839_v19 = vld [vmem:[#allocation6 + $0x220] sm:$0xff] }
  0xab   : > { %1345 = vmatprep.subr.mxu0 %v864_v61  ;;  %1420 = vmatprep.subr.mxu1 %v984_v8  ;;  %v840_v17 = vld [vmem:[#allocation6 + $0x228] sm:$0xff]  ;;  %v971_v22 = vld [vmem:[#allocation6 + $0x640] sm:$0xff] }
  0xac   : > { %1346 = vmatpush2.msra.mxu0 %v863_v63  ;;  %1421 = vmatpush2.msra.mxu1 %v983_v10  ;;  %v972_v20 = vld [vmem:[#allocation6 + $0x648] sm:$0xff]  ;;  %v835_v23 = vld [vmem:[#allocation6 + $0x200] sm:$0xff] }
  0xad   : > { %1347 = vmatprep.subr.mxu0 %v860_v1  ;;  %1422 = vmatprep.subr.mxu1 %v980_v12  ;;  %v836_v21 = vld [vmem:[#allocation6 + $0x208] sm:$0xff]  ;;  %v967_v26 = vld [vmem:[#allocation6 + $0x620] sm:$0xff] }
  0xae   : > { %1348 = vmatpush2.msra.mxu0 %v859_v2  ;;  %1423 = vmatpush2.msra.mxu1 %v979_v14  ;;  %v1088_v24 = vld [vmem:[#allocation6 + $0x9e8] sm:$0xff]  ;;  %v963_v28 = vld [vmem:[#allocation6 + $0x600] sm:$0xff] }
  0xaf   : > { %1349 = vmatprep.subr.mxu0 %v856_v3  ;;  %1424 = vmatprep.subr.mxu1 %v976_v16  ;;  %v968_v25 = vld [vmem:[#allocation6 + $0x628] sm:$0xff]  ;;  %v1087_v48 = vld [vmem:[#allocation6 + $0x9e0] sm:$0xff] }
  0xb0   : > { %1350 = vmatpush2.msra.mxu0 %v855_v4  ;;  %1425 = vmatpush2.msra.mxu1 %v975_v18  ;;  %v964_v27 = vld [vmem:[#allocation6 + $0x608] sm:$0xff]  ;;  %v1083_v52 = vld [vmem:[#allocation6 + $0x9c0] sm:$0xff] }
  0xb1   : > { %1351 = vmatprep.subr.mxu0 %v852_v5  ;;  %1426 = vmatprep.subr.mxu1 %v972_v20  ;;  %v1216_v29 = vld [vmem:[#allocation6 + $0xde8] sm:$0xff]  ;;  %v1079_v55 = vld [vmem:[#allocation6 + $0x9a0] sm:$0xff] }
  0xb2   : > { %1352 = vmatpush2.msra.mxu0 %v851_v7  ;;  %1427 = vmatpush2.msra.mxu1 %v971_v22  ;;  %v1084_v49 = vld [vmem:[#allocation6 + $0x9c8] sm:$0xff]  ;;  %v1075_v59 = vld [vmem:[#allocation6 + $0x980] sm:$0xff] }
  0xb3   : > { %1353 = vmatprep.subr.mxu0 %v848_v9  ;;  %1428 = vmatprep.subr.mxu1 %v968_v25  ;;  %v1080_v54 = vld [vmem:[#allocation6 + $0x9a8] sm:$0xff]  ;;  %v1215_v60 = vld [vmem:[#allocation6 + $0xde0] sm:$0xff] }
  0xb4   : > { %1354 = vmatpush2.msra.mxu0 %v847_v11  ;;  %1429 = vmatpush2.msra.mxu1 %v967_v26  ;;  %v1076_v57 = vld [vmem:[#allocation6 + $0x988] sm:$0xff]  ;;  %v1071_v63 = vld [vmem:[#allocation6 + $0x960] sm:$0xff] }
  0xb5   : > { %1355 = vmatprep.subr.mxu0 %v844_v13  ;;  %1430 = vmatprep.subr.mxu1 %v964_v27  ;;  %v1072_v61 = vld [vmem:[#allocation6 + $0x968] sm:$0xff]  ;;  %v1211_v1 = vld [vmem:[#allocation6 + $0xdc0] sm:$0xff] }
  0xb6   : > { %1356 = vmatpush2.msra.mxu0 %v843_v15  ;;  %1431 = vmatpush2.msra.mxu1 %v963_v28  ;;  %v1212_v62 = vld [vmem:[#allocation6 + $0xdc8] sm:$0xff]  ;;  %v1067_v4 = vld [vmem:[#allocation6 + $0x940] sm:$0xff] }
  0xb7   : > { %1357 = vmatprep.subr.mxu0 %v840_v17  ;;  %1510 = vmatprep.subr.mxu1 %v1216_v29  ;;  %v1068_v2 = vld [vmem:[#allocation6 + $0x948] sm:$0xff]  ;;  %v1207_v5 = vld [vmem:[#allocation6 + $0xda0] sm:$0xff] }
  0xb8   : > { %1358 = vmatpush2.msra.mxu0 %v839_v19  ;;  %v1208_v3 = vld [vmem:[#allocation6 + $0xda8] sm:$0xff]  ;;  %v1063_v8 = vld [vmem:[#allocation6 + $0x920] sm:$0xff] }
  0xb9   : > { %1359 = vmatprep.subr.mxu0 %v836_v21  ;;  %v1064_v6 = vld [vmem:[#allocation6 + $0x928] sm:$0xff]  ;;  %v1203_v9 = vld [vmem:[#allocation6 + $0xd80] sm:$0xff] }
  0xba   : > { %1360 = vmatpush2.msra.mxu0 %v835_v23  ;;  %v1204_v7 = vld [vmem:[#allocation6 + $0xd88] sm:$0xff]  ;;  %v1059_v12 = vld [vmem:[#allocation6 + $0x900] sm:$0xff] }
  0xbb   : > { %1439 = vmatprep.subr.mxu0 %v1088_v24  ;;  %v1060_v10 = vld [vmem:[#allocation6 + $0x908] sm:$0xff]  ;;  %v1199_v13 = vld [vmem:[#allocation6 + $0xd60] sm:$0xff] }
  0xbc   : > { %v1200_v11 = vld [vmem:[#allocation6 + $0xd68] sm:$0xff]  ;;  %v1055_v16 = vld [vmem:[#allocation6 + $0x8e0] sm:$0xff] }
  0xbd   : > { %v1056_v14 = vld [vmem:[#allocation6 + $0x8e8] sm:$0xff]  ;;  %v1195_v17 = vld [vmem:[#allocation6 + $0xd40] sm:$0xff] }
  0xbe   : > { %v1196_v15 = vld [vmem:[#allocation6 + $0xd48] sm:$0xff]  ;;  %v1051_v20 = vld [vmem:[#allocation6 + $0x8c0] sm:$0xff] }
  0xbf   : > { %v1052_v18 = vld [vmem:[#allocation6 + $0x8c8] sm:$0xff]  ;;  %v1191_v21 = vld [vmem:[#allocation6 + $0xd20] sm:$0xff] }
  0xc0   : > { %v1192_v19 = vld [vmem:[#allocation6 + $0xd28] sm:$0xff]  ;;  %v1047_v24 = vld [vmem:[#allocation6 + $0x8a0] sm:$0xff] }
  0xc1   : > { %v1048_v22 = vld [vmem:[#allocation6 + $0x8a8] sm:$0xff]  ;;  %v1187_v25 = vld [vmem:[#allocation6 + $0xd00] sm:$0xff] }
  0xc2   : > { %v1188_v23 = vld [vmem:[#allocation6 + $0xd08] sm:$0xff]  ;;  %v1043_v28 = vld [vmem:[#allocation6 + $0x880] sm:$0xff] }
  0xc3   : > { %v1044_v26 = vld [vmem:[#allocation6 + $0x888] sm:$0xff]  ;;  %v1183_v29 = vld [vmem:[#allocation6 + $0xce0] sm:$0xff] }
  0xc4   : > { %v1184_v27 = vld [vmem:[#allocation6 + $0xce8] sm:$0xff] }
  0xc5   : > { %v1040_v30 = vld [vmem:[#allocation6 + $0x868] sm:$0xff] }
 0x12f   : > { %v545_v37 = vpop.f32.mrf.mxu0 }
 0x130   : > { %v2836_v40 = vadd.f32 %v545_v37, %v438_v35  ;;  %v1180_v35 = vld [vmem:[#allocation6 + $0xcc8] sm:$0xff]  ;;  %v1179_v37 = vld [vmem:[#allocation6 + $0xcc0] sm:$0xff] }
 0x131   : > { %v547_v41 = vpop.f32.mrf.mxu0 }
 0x132   : > { %v2838_v42 = vadd.f32 %v547_v41, %v442_v36  ;;  %v763_v46 = vmax.f32 %v2836_v40, 0.0  ;;  %v1039_v36 = vld [vmem:[#allocation6 + $0x860] sm:$0xff]  ;;  %v1036_v41 = vld [vmem:[#allocation6 + $0x848] sm:$0xff]  ;;  %v1082_v40 = vld [vmem:[#allocation6 + $0x9b8] sm:$0xff] }
 0x134   : > { %v764_v44 = vmax.f32 %v2838_v42, 0.0  ;;  %v821_v42 = vld [vmem:[#allocation6 + $0x190] sm:$0xff] }
 0x135   : > { %v616_v47 = vpop.f32.mrf.mxu0 }
 0x136   : > { %1361 = vmatprep.mubr.f32.mxu0 %v764_v44  ;;  %v2850_v50 = vadd.f32 %v616_v47, %v446_v43  ;;  %v1176_v43 = vld [vmem:[#allocation6 + $0xca8] sm:$0xff]  ;;  %v1175_v47 = vld [vmem:[#allocation6 + $0xca0] sm:$0xff] }
 0x137   : > { %v618_v51 = vpop.f32.mrf.mxu0  ;;  %1362 = vmatmul.mubr.f32.vlgmr.msra.gmra.mxu0 %v763_v46 }
 0x138   : > { %v2854_v53 = vadd.f32 %v618_v51, %v450_v45  ;;  %1440 = vmatpush1.msra.mxu0 %v1087_v48  ;;  %v765_v58 = vmax.f32 %v2850_v50, 0.0  ;;  %v1035_v45 = vld [vmem:[#allocation6 + $0x840] sm:$0xff]  ;;  %v1032_v48 = vld [vmem:[#allocation6 + $0x828] sm:$0xff]  ;;  %v1081_v50 = vld [vmem:[#allocation6 + $0x9b0] sm:$0xff] }
 0x139   : > { %1441 = vmatprep.subr.mxu0 %v1084_v49  ;;  %v1172_v49 = vld [vmem:[#allocation6 + $0xc88] sm:$0xff]  ;;  %v1031_v51 = vld [vmem:[#allocation6 + $0x820] sm:$0xff] }
 0x13a   : > { %v766_v56 = vmax.f32 %v2854_v53, 0.0  ;;  %1442 = vmatpush1.msra.mxu0 %v1083_v52  ;;  %v1171_v52 = vld [vmem:[#allocation6 + $0xc80] sm:$0xff]  ;;  %v817_v53 = vld [vmem:[#allocation6 + $0x170] sm:$0xff] }
 0x13b   : > { %1443 = vmatprep.subr.mxu0 %v1080_v54  ;;  %v1028_v54 = vld [vmem:[#allocation6 + $0x808] sm:$0xff] }
 0x13c   : > { %1444 = vmatpush1.msra.mxu0 %v1079_v55  ;;  %1432 = vmatprep.mubr.f32.mxu1 %v766_v56  ;;  %v1168_v55 = vld [vmem:[#allocation6 + $0xc68] sm:$0xff] }
 0x13d   : > { %1445 = vmatprep.subr.mxu0 %v1076_v57  ;;  %1433 = vmatmul.mubr.f32.vlgmr.msra.gmra.mxu1 %v765_v58  ;;  %v1027_v57 = vld [vmem:[#allocation6 + $0x800] sm:$0xff] }
 0x13e   : > { %1446 = vmatpush1.msra.mxu0 %v1075_v59  ;;  %1511 = vmatpush1.msra.mxu1 %v1215_v60  ;;  %v1167_v59 = vld [vmem:[#allocation6 + $0xc60] sm:$0xff]  ;;  %v1152_v60 = vld [vmem:[#allocation6 + $0xbe8] sm:$0xff] }
 0x13f   : > { %1447 = vmatprep.subr.mxu0 %v1072_v61  ;;  %1512 = vmatprep.subr.mxu1 %v1212_v62  ;;  %v1164_v61 = vld [vmem:[#allocation6 + $0xc48] sm:$0xff]  ;;  %v1151_v62 = vld [vmem:[#allocation6 + $0xbe0] sm:$0xff] }
 0x140   : > { %1448 = vmatpush1.msra.mxu0 %v1071_v63  ;;  %1513 = vmatpush1.msra.mxu1 %v1211_v1  ;;  %v1163_v63 = vld [vmem:[#allocation6 + $0xc40] sm:$0xff]  ;;  %v1148_v1 = vld [vmem:[#allocation6 + $0xbc8] sm:$0xff] }
 0x141   : > { %1449 = vmatprep.subr.mxu0 %v1068_v2  ;;  %1514 = vmatprep.subr.mxu1 %v1208_v3  ;;  %v1160_v2 = vld [vmem:[#allocation6 + $0xc28] sm:$0xff]  ;;  %v1147_v3 = vld [vmem:[#allocation6 + $0xbc0] sm:$0xff] }
 0x142   : > { %1450 = vmatpush1.msra.mxu0 %v1067_v4  ;;  %1515 = vmatpush1.msra.mxu1 %v1207_v5  ;;  %v1159_v4 = vld [vmem:[#allocation6 + $0xc20] sm:$0xff]  ;;  %v1144_v5 = vld [vmem:[#allocation6 + $0xba8] sm:$0xff] }
 0x143   : > { %1451 = vmatprep.subr.mxu0 %v1064_v6  ;;  %1516 = vmatprep.subr.mxu1 %v1204_v7  ;;  %v1156_v6 = vld [vmem:[#allocation6 + $0xc08] sm:$0xff]  ;;  %v1143_v7 = vld [vmem:[#allocation6 + $0xba0] sm:$0xff] }
 0x144   : > { %1452 = vmatpush1.msra.mxu0 %v1063_v8  ;;  %1517 = vmatpush1.msra.mxu1 %v1203_v9  ;;  %v1155_v8 = vld [vmem:[#allocation6 + $0xc00] sm:$0xff]  ;;  %v1140_v9 = vld [vmem:[#allocation6 + $0xb88] sm:$0xff] }
 0x145   : > { %1453 = vmatprep.subr.mxu0 %v1060_v10  ;;  %1518 = vmatprep.subr.mxu1 %v1200_v11  ;;  %v1268_v10 = vld [vmem:[#allocation6 + $0xf88] sm:$0xff]  ;;  %v1139_v11 = vld [vmem:[#allocation6 + $0xb80] sm:$0xff] }
 0x146   : > { %1454 = vmatpush1.msra.mxu0 %v1059_v12  ;;  %1519 = vmatpush1.msra.mxu1 %v1199_v13  ;;  %v1267_v12 = vld [vmem:[#allocation6 + $0xf80] sm:$0xff]  ;;  %v1136_v13 = vld [vmem:[#allocation6 + $0xb68] sm:$0xff] }
 0x147   : > { %1455 = vmatprep.subr.mxu0 %v1056_v14  ;;  %1520 = vmatprep.subr.mxu1 %v1196_v15  ;;  %v1264_v14 = vld [vmem:[#allocation6 + $0xf68] sm:$0xff]  ;;  %v1135_v15 = vld [vmem:[#allocation6 + $0xb60] sm:$0xff] }
 0x148   : > { %1456 = vmatpush1.msra.mxu0 %v1055_v16  ;;  %1521 = vmatpush1.msra.mxu1 %v1195_v17  ;;  %v1263_v16 = vld [vmem:[#allocation6 + $0xf60] sm:$0xff]  ;;  %v1132_v17 = vld [vmem:[#allocation6 + $0xb48] sm:$0xff] }
 0x149   : > { %1457 = vmatprep.subr.mxu0 %v1052_v18  ;;  %1522 = vmatprep.subr.mxu1 %v1192_v19  ;;  %v1260_v18 = vld [vmem:[#allocation6 + $0xf48] sm:$0xff]  ;;  %v1131_v19 = vld [vmem:[#allocation6 + $0xb40] sm:$0xff] }
 0x14a   : > { %1458 = vmatpush1.msra.mxu0 %v1051_v20  ;;  %1523 = vmatpush1.msra.mxu1 %v1191_v21  ;;  %v1259_v20 = vld [vmem:[#allocation6 + $0xf40] sm:$0xff]  ;;  %v1128_v21 = vld [vmem:[#allocation6 + $0xb28] sm:$0xff] }
 0x14b   : > { %1459 = vmatprep.subr.mxu0 %v1048_v22  ;;  %1524 = vmatprep.subr.mxu1 %v1188_v23  ;;  %v1256_v22 = vld [vmem:[#allocation6 + $0xf28] sm:$0xff]  ;;  %v1127_v23 = vld [vmem:[#allocation6 + $0xb20] sm:$0xff] }
 0x14c   : > { %1460 = vmatpush1.msra.mxu0 %v1047_v24  ;;  %1525 = vmatpush1.msra.mxu1 %v1187_v25  ;;  %v1255_v24 = vld [vmem:[#allocation6 + $0xf20] sm:$0xff]  ;;  %v1124_v25 = vld [vmem:[#allocation6 + $0xb08] sm:$0xff] }
 0x14d   : > { %1461 = vmatprep.subr.mxu0 %v1044_v26  ;;  %1526 = vmatprep.subr.mxu1 %v1184_v27  ;;  %v1252_v26 = vld [vmem:[#allocation6 + $0xf08] sm:$0xff]  ;;  %v1123_v27 = vld [vmem:[#allocation6 + $0xb00] sm:$0xff] }
 0x14e   : > { %1462 = vmatpush1.msra.mxu0 %v1043_v28  ;;  %1527 = vmatpush1.msra.mxu1 %v1183_v29  ;;  %v1251_v28 = vld [vmem:[#allocation6 + $0xf00] sm:$0xff]  ;;  %v1120_v29 = vld [vmem:[#allocation6 + $0xae8] sm:$0xff] }
 0x14f   : > { %1463 = vmatprep.subr.mxu0 %v1040_v30  ;;  %1528 = vmatprep.subr.mxu1 %v1180_v35  ;;  %v1248_v30 = vld [vmem:[#allocation6 + $0xee8] sm:$0xff]  ;;  %v1119_v35 = vld [vmem:[#allocation6 + $0xae0] sm:$0xff] }
 0x150   : > { %1464 = vmatpush1.msra.mxu0 %v1039_v36  ;;  %1529 = vmatpush1.msra.mxu1 %v1179_v37  ;;  %v1247_v36 = vld [vmem:[#allocation6 + $0xee0] sm:$0xff]  ;;  %v1116_v37 = vld [vmem:[#allocation6 + $0xac8] sm:$0xff] }
 0x151   : > { %1465 = vmatprep.subr.mxu0 %v1036_v41  ;;  %1530 = vmatprep.subr.mxu1 %v1176_v43  ;;  %v1244_v41 = vld [vmem:[#allocation6 + $0xec8] sm:$0xff]  ;;  %v465_v43 = vsub.s32 7, %v2822_v31 }
 0x152   : > { %1466 = vmatpush1.msra.mxu0 %v1035_v45  ;;  %1531 = vmatpush1.msra.mxu1 %v1175_v47  ;;  %v1115_v45 = vld [vmem:[#allocation6 + $0xac0] sm:$0xff] }
 0x153   : > { %1467 = vmatprep.subr.mxu0 %v1032_v48  ;;  %1532 = vmatprep.subr.mxu1 %v1172_v49  ;;  %v1243_v47 = vld [vmem:[#allocation6 + $0xec0] sm:$0xff]  ;;  %v758_v48 = vpop.f32.mrf.mxu1  ;;  %v457_v49 = vsub.s32 5, %v2822_v31 }
 0x154   : > { %1468 = vmatpush1.msra.mxu0 %v1031_v51  ;;  %1533 = vmatpush1.msra.mxu1 %v1171_v52  ;;  %v1112_v51 = vld [vmem:[#allocation6 + $0xaa8] sm:$0xff] }
 0x155   : > { %1469 = vmatprep.subr.mxu0 %v1028_v54  ;;  %1534 = vmatprep.subr.mxu1 %v1168_v55  ;;  %v1240_v52 = vld [vmem:[#allocation6 + $0xea8] sm:$0xff]  ;;  %v453_v54 = vsub.s32 4, %v2822_v31  ;;  %v687_v55 = vpop.f32.mrf.mxu0 }
 0x156   : > { %1470 = vmatpush1.msra.mxu0 %v1027_v57  ;;  %1535 = vmatpush1.msra.mxu1 %v1167_v59  ;;  %v1111_v57 = vld [vmem:[#allocation6 + $0xaa0] sm:$0xff] }
 0x157   : > { %1471 = vmatprep.subr.mxu0 %v1152_v60  ;;  %1536 = vmatprep.subr.mxu1 %v1164_v61  ;;  %v1239_v59 = vld [vmem:[#allocation6 + $0xea0] sm:$0xff]  ;;  %v1108_v60 = vld [vmem:[#allocation6 + $0xa88] sm:$0xff] }
 0x158   : > { %1472 = vmatpush2.msra.mxu0 %v1151_v62  ;;  %1537 = vmatpush1.msra.mxu1 %v1163_v63  ;;  %v1236_v61 = vld [vmem:[#allocation6 + $0xe88] sm:$0xff]  ;;  %v461_v62 = vsub.s32 6, %v2822_v31  ;;  %v466_v63 = vrot.slane %v2825_v33, %v465_v43  ;;  %v830_v43 = vld [vmem:[#allocation6 + $0x1d8] sm:$0xff] }
 0x159   : > { %1473 = vmatprep.subr.mxu0 %v1148_v1  ;;  %1538 = vmatprep.subr.mxu1 %v1160_v2  ;;  %v1107_v1 = vld [vmem:[#allocation6 + $0xa80] sm:$0xff] }
 0x15a   : > { %1474 = vmatpush2.msra.mxu0 %v1147_v3  ;;  %1539 = vmatpush1.msra.mxu1 %v1159_v4  ;;  %v1235_v2 = vld [vmem:[#allocation6 + $0xe80] sm:$0xff]  ;;  %v760_v3 = vpop.f32.mrf.mxu1  ;;  %v458_v4 = vrot.slane %v2825_v33, %v457_v49  ;;  %v826_v49 = vld [vmem:[#allocation6 + $0x1b8] sm:$0xff] }
 0x15b   : > { %1475 = vmatprep.subr.mxu0 %v1144_v5  ;;  %1540 = vmatprep.subr.mxu1 %v1156_v6  ;;  %v454_v5 = vrot.slane %v2825_v33, %v453_v54  ;;  %v1104_v6 = vld [vmem:[#allocation6 + $0xa68] sm:$0xff]  ;;  %v953_v54 = vld [vmem:[#allocation6 + $0x5b0] sm:$0xff] }
 0x15c   : > { %1476 = vmatpush2.msra.mxu0 %v1143_v7  ;;  %1541 = vmatpush1.msra.mxu1 %v1155_v8  ;;  %v1232_v7 = vld [vmem:[#allocation6 + $0xe68] sm:$0xff]  ;;  %v689_v8 = vpop.f32.mrf.mxu0 }
 0x15d   : > { %1477 = vmatprep.subr.mxu0 %v1140_v9  ;;  %1548 = vmatprep.subr.mxu1 %v1268_v10  ;;  %v1103_v9 = vld [vmem:[#allocation6 + $0xa60] sm:$0xff] }
 0x15e   : > { %1478 = vmatpush2.msra.mxu0 %v1139_v11  ;;  %1549 = vmatpush2.msra.mxu1 %v1267_v12  ;;  %v1231_v10 = vld [vmem:[#allocation6 + $0xe60] sm:$0xff]  ;;  %v462_v11 = vrot.slane %v2825_v33, %v461_v62  ;;  %v2870_v12 = vadd.f32 %v760_v3, %v466_v63  ;;  %v942_v62 = vld [vmem:[#allocation6 + $0x558] sm:$0xff]  ;;  %v813_v63 = vld [vmem:[#allocation6 + $0x150] sm:$0xff] }
 0x15f   : > { %1479 = vmatprep.subr.mxu0 %v1136_v13  ;;  %1550 = vmatprep.subr.mxu1 %v1264_v14  ;;  %v1100_v13 = vld [vmem:[#allocation6 + $0xa48] sm:$0xff]  ;;  %v1095_v33 = vld [vmem:[#allocation6 + $0xa20] sm:$0xff]  ;;  %v938_v3 = vld [vmem:[#allocation6 + $0x538] sm:$0xff] }
 0x160   : > { %1480 = vmatpush2.msra.mxu0 %v1135_v15  ;;  %1551 = vmatpush2.msra.mxu1 %v1263_v16  ;;  %v1228_v14 = vld [vmem:[#allocation6 + $0xe48] sm:$0xff]  ;;  %v2872_v15 = vadd.f32 %v689_v8, %v458_v4  ;;  %v1099_v16 = vld [vmem:[#allocation6 + $0xa40] sm:$0xff]  ;;  %v809_v4 = vld [vmem:[#allocation6 + $0x130] sm:$0xff] }
 0x161   : > { %1481 = vmatprep.subr.mxu0 %v1132_v17  ;;  %1552 = vmatprep.subr.mxu1 %v1260_v18  ;;  %v1227_v17 = vld [vmem:[#allocation6 + $0xe40] sm:$0xff]  ;;  %v2874_v18 = vadd.f32 %v687_v55, %v454_v5  ;;  %v822_v55 = vld [vmem:[#allocation6 + $0x198] sm:$0xff]  ;;  %v937_v5 = vld [vmem:[#allocation6 + $0x530] sm:$0xff] }
 0x162   : > { %1482 = vmatpush2.msra.mxu0 %v1131_v19  ;;  %1553 = vmatpush2.msra.mxu1 %v1259_v20  ;;  %v1096_v19 = vld [vmem:[#allocation6 + $0xa28] sm:$0xff]  ;;  %v805_v8 = vld [vmem:[#allocation6 + $0x110] sm:$0xff] }
 0x163   : > { %1483 = vmatprep.subr.mxu0 %v1128_v21  ;;  %1554 = vmatprep.subr.mxu1 %v1256_v22  ;;  %v1224_v20 = vld [vmem:[#allocation6 + $0xe28] sm:$0xff]  ;;  %v1223_v21 = vld [vmem:[#allocation6 + $0xe20] sm:$0xff]  ;;  %v2876_v22 = vadd.f32 %v758_v48, %v462_v11  ;;  %v957_v48 = vld [vmem:[#allocation6 + $0x5d0] sm:$0xff] }
 0x164   : > { %1484 = vmatpush2.msra.mxu0 %v1127_v23  ;;  %1555 = vmatpush2.msra.mxu1 %v1255_v24  ;;  %v770_v23 = vmax.f32 %v2870_v12, 0.0  ;;  %v1092_v24 = vld [vmem:[#allocation6 + $0xa08] sm:$0xff]  ;;  %v930_v11 = vld [vmem:[#allocation6 + $0x4f8] sm:$0xff] }
 0x165   : > { %1485 = vmatprep.subr.mxu0 %v1124_v25  ;;  %1556 = vmatprep.subr.mxu1 %v1252_v26  ;;  %v1220_v25 = vld [vmem:[#allocation6 + $0xe08] sm:$0xff]  ;;  %v768_v26 = vmax.f32 %v2872_v15, 0.0  ;;  %v1077_v15 = vld [vmem:[#allocation6 + $0x990] sm:$0xff]  ;;  %v1202_v12 = vld [vmem:[#allocation6 + $0xd78] sm:$0xff] }
 0x166   : > { %1486 = vmatpush2.msra.mxu0 %v1123_v27  ;;  %1557 = vmatpush2.msra.mxu1 %v1251_v28  ;;  %v1091_v27 = vld [vmem:[#allocation6 + $0xa00] sm:$0xff]  ;;  %v767_v28 = vmax.f32 %v2874_v18, 0.0  ;;  %v1879_v18 = vld [vmem:[%s3188_s5 + $0x50] sm:$0xff] }
 0x167   : > { %1487 = vmatprep.subr.mxu0 %v1120_v29  ;;  %1558 = vmatprep.subr.mxu1 %v1248_v30  ;;  %v1219_v29 = vld [vmem:[#allocation6 + $0xe00] sm:$0xff]  ;;  %v769_v30 = vmax.f32 %v2876_v22, 0.0 }
 0x168   : > { %1488 = vmatpush2.msra.mxu0 %v1119_v35  ;;  %1559 = vmatpush2.msra.mxu1 %v1247_v36  ;;  %v834_v35 = vld [vmem:[#allocation6 + $0x1f8] sm:$0xff]  ;;  %v1898_v22 = vld [vmem:[%s3188_s5 + $0xe8] sm:$0xff] }
 0x169   : > { %1489 = vmatprep.subr.mxu0 %v1116_v37  ;;  %1560 = vmatprep.subr.mxu1 %v1244_v41  ;;  %v962_v36 = vld [vmem:[#allocation6 + $0x5f8] sm:$0xff]  ;;  %v833_v37 = vld [vmem:[#allocation6 + $0x1f0] sm:$0xff] }
 0x16a   : > { %1490 = vmatpush2.msra.mxu0 %v1115_v45  ;;  %1561 = vmatpush2.msra.mxu1 %v1243_v47  ;;  %v961_v41 = vld [vmem:[#allocation6 + $0x5f0] sm:$0xff]  ;;  %v958_v45 = vld [vmem:[#allocation6 + $0x5d8] sm:$0xff] }
 0x16b   : > { %1491 = vmatprep.subr.mxu0 %v1112_v51  ;;  %1562 = vmatprep.subr.mxu1 %v1240_v52  ;;  %v829_v47 = vld [vmem:[#allocation6 + $0x1d0] sm:$0xff]  ;;  %v954_v51 = vld [vmem:[#allocation6 + $0x5b8] sm:$0xff] }
 0x16c   : > { %1492 = vmatpush2.msra.mxu0 %v1111_v57  ;;  %1563 = vmatpush2.msra.mxu1 %v1239_v59  ;;  %v825_v52 = vld [vmem:[#allocation6 + $0x1b0] sm:$0xff]  ;;  %v950_v57 = vld [vmem:[#allocation6 + $0x598] sm:$0xff] }
 0x16d   : > { %1493 = vmatprep.subr.mxu0 %v1108_v60  ;;  %1564 = vmatprep.subr.mxu1 %v1236_v61  ;;  %v818_v59 = vld [vmem:[#allocation6 + $0x178] sm:$0xff] }
 0x16e   : > { %1494 = vmatpush2.msra.mxu0 %v1107_v1  ;;  %1565 = vmatpush2.msra.mxu1 %v1235_v2  ;;  %v946_v60 = vld [vmem:[#allocation6 + $0x578] sm:$0xff]  ;;  %v941_v1 = vld [vmem:[#allocation6 + $0x550] sm:$0xff] }
 0x16f   : > { %1495 = vmatprep.subr.mxu0 %v1104_v6  ;;  %1566 = vmatprep.subr.mxu1 %v1232_v7  ;;  %v814_v61 = vld [vmem:[#allocation6 + $0x158] sm:$0xff] }
 0x170   : > { %1496 = vmatpush2.msra.mxu0 %v1103_v9  ;;  %1567 = vmatpush2.msra.mxu1 %v1231_v10  ;;  %v810_v2 = vld [vmem:[#allocation6 + $0x138] sm:$0xff]  ;;  %v933_v9 = vld [vmem:[#allocation6 + $0x510] sm:$0xff] }
 0x171   : > { %1497 = vmatprep.subr.mxu0 %v1100_v13  ;;  %1568 = vmatprep.subr.mxu1 %v1228_v14  ;;  %v806_v6 = vld [vmem:[#allocation6 + $0x118] sm:$0xff]  ;;  %v801_v13 = vld [vmem:[#allocation6 + $0xf0] sm:$0xff] }
 0x172   : > { %1498 = vmatpush2.msra.mxu0 %v1099_v16  ;;  %1569 = vmatpush2.msra.mxu1 %v1227_v17  ;;  %v934_v7 = vld [vmem:[#allocation6 + $0x518] sm:$0xff]  ;;  %v929_v14 = vld [vmem:[#allocation6 + $0x4f0] sm:$0xff] }
 0x173   : > { %1499 = vmatprep.subr.mxu0 %v1096_v19  ;;  %1570 = vmatprep.subr.mxu1 %v1224_v20  ;;  %v802_v10 = vld [vmem:[#allocation6 + $0xf8] sm:$0xff]  ;;  %v797_v19 = vld [vmem:[#allocation6 + $0xd0] sm:$0xff] }
 0x174   : > { %1500 = vmatpush2.msra.mxu0 %v1095_v33  ;;  %1571 = vmatpush2.msra.mxu1 %v1223_v21  ;;  %v798_v16 = vld [vmem:[#allocation6 + $0xd8] sm:$0xff]  ;;  %v925_v20 = vld [vmem:[#allocation6 + $0x4d0] sm:$0xff] }
 0x175   : > { %1501 = vmatprep.subr.mxu0 %v1092_v24  ;;  %1572 = vmatprep.subr.mxu1 %v1220_v25  ;;  %v926_v17 = vld [vmem:[#allocation6 + $0x4d8] sm:$0xff]  ;;  %v793_v24 = vld [vmem:[#allocation6 + $0xb0] sm:$0xff] }
 0x176   : > { %2316 = vmatprep.mubr.msk.f32.mxu1 %vm1293_vm1, %v770_v23  ;;  %1502 = vmatpush2.msra.mxu0 %v1091_v27  ;;  %v794_v33 = vld [vmem:[#allocation6 + $0xb8] sm:$0xff]  ;;  %v921_v25 = vld [vmem:[#allocation6 + $0x4b0] sm:$0xff] }
 0x177   : > { %1503 = vmatprep.mubr.f32.mxu0 %v768_v26  ;;  %1573 = vmatpush2.msra.mxu1 %v1219_v29  ;;  %v922_v21 = vld [vmem:[#allocation6 + $0x4b8] sm:$0xff] }
 0x178   : > { %1504 = vmatmul.mubr.f32.vlgmr.msra.gmra.mxu0 %v767_v28  ;;  %1575 = vmatmul.mubr.f32.vlgmr.msra.gmra.mxu1 %v769_v30  ;;  %v790_v27 = vld [vmem:[#allocation6 + $0x98] sm:$0xff] }
 0x179   : > { %1581 = vmatprep.subr.mxu1 %v834_v35  ;;  %1652 = vmatprep.subr.mxu0 %v962_v36  ;;  %v918_v29 = vld [vmem:[#allocation6 + $0x498] sm:$0xff]  ;;  %v789_v35 = vld [vmem:[#allocation6 + $0x90] sm:$0xff] }
 0x17a   : > { %1582 = vmatpush1.msra.mxu1 %v833_v37  ;;  %1645 = vmatprep.mubr.f32.mxu1 %v764_v44  ;;  %v949_v44 = vld [vmem:[#allocation6 + $0x590] sm:$0xff]  ;;  %v786_v37 = vld [vmem:[#allocation6 + $0x78] sm:$0xff] }
 0x17b   : > { %1653 = vmatpush1.msra.mxu0 %v961_v41  ;;  %1716 = vmatprep.mubr.f32.mxu0 %v766_v56  ;;  %v945_v56 = vld [vmem:[#allocation6 + $0x570] sm:$0xff]  ;;  %v914_v41 = vld [vmem:[#allocation6 + $0x478] sm:$0xff] }
 0x17c   : > { %1583 = vmatprep.subr.mxu1 %v830_v43  ;;  %1654 = vmatprep.subr.mxu0 %v958_v45  ;;  %v917_v36 = vld [vmem:[#allocation6 + $0x490] sm:$0xff] }
 0x17d   : > { %1584 = vmatpush1.msra.mxu1 %v829_v47  ;;  %1655 = vmatpush1.msra.mxu0 %v957_v48  ;;  %v785_v43 = vld [vmem:[#allocation6 + $0x70] sm:$0xff]  ;;  %v782_v47 = vld [vmem:[#allocation6 + $0x58] sm:$0xff] }
 0x17e   : > { %1585 = vmatprep.subr.mxu1 %v826_v49  ;;  %1656 = vmatprep.subr.mxu0 %v954_v51  ;;  %v913_v45 = vld [vmem:[#allocation6 + $0x470] sm:$0xff]  ;;  %v910_v48 = vld [vmem:[#allocation6 + $0x458] sm:$0xff] }
 0x17f   : > { %1586 = vmatpush1.msra.mxu1 %v825_v52  ;;  %1657 = vmatpush1.msra.mxu0 %v953_v54  ;;  %v781_v49 = vld [vmem:[#allocation6 + $0x50] sm:$0xff]  ;;  %v778_v52 = vld [vmem:[#allocation6 + $0x38] sm:$0xff] }
 0x180   : > { %1587 = vmatprep.subr.mxu1 %v822_v55  ;;  %1658 = vmatprep.subr.mxu0 %v950_v57  ;;  %v909_v51 = vld [vmem:[#allocation6 + $0x450] sm:$0xff]  ;;  %v906_v54 = vld [vmem:[#allocation6 + $0x438] sm:$0xff] }
 0x181   : > { %1588 = vmatpush1.msra.mxu1 %v821_v42  ;;  %1659 = vmatpush1.msra.mxu0 %v949_v44  ;;  %v777_v55 = vld [vmem:[#allocation6 + $0x30] sm:$0xff]  ;;  %v774_v42 = vld [vmem:[#allocation6 + $0x18] sm:$0xff] }
 0x182   : > { %1589 = vmatprep.subr.mxu1 %v818_v59  ;;  %1660 = vmatprep.subr.mxu0 %v946_v60  ;;  %v905_v57 = vld [vmem:[#allocation6 + $0x430] sm:$0xff]  ;;  %v902_v44 = vld [vmem:[#allocation6 + $0x418] sm:$0xff] }
 0x183   : > { %1590 = vmatpush1.msra.mxu1 %v817_v53  ;;  %1661 = vmatpush1.msra.mxu0 %v945_v56  ;;  %v773_v59 = vld [vmem:[#allocation6 + $0x10] sm:$0xff]  ;;  %v898_v53 = vld [vmem:[#allocation6 + $0x3f8] sm:$0xff] }
 0x184   : > { %1591 = vmatprep.subr.mxu1 %v814_v61  ;;  %1662 = vmatprep.subr.mxu0 %v942_v62  ;;  %v901_v60 = vld [vmem:[#allocation6 + $0x410] sm:$0xff]  ;;  %v1026_v56 = vld [vmem:[#allocation6 + $0x7f8] sm:$0xff] }
 0x185   : > { %1592 = vmatpush1.msra.mxu1 %v813_v63  ;;  %1663 = vmatpush1.msra.mxu0 %v941_v1  ;;  %v897_v61 = vld [vmem:[#allocation6 + $0x3f0] sm:$0xff]  ;;  %v894_v63 = vld [vmem:[#allocation6 + $0x3d8] sm:$0xff] }
 0x186   : > { %1593 = vmatprep.subr.mxu1 %v810_v2  ;;  %1664 = vmatprep.subr.mxu0 %v938_v3  ;;  %v1025_v62 = vld [vmem:[#allocation6 + $0x7f0] sm:$0xff]  ;;  %v1022_v1 = vld [vmem:[#allocation6 + $0x7d8] sm:$0xff] }
 0x187   : > { %1594 = vmatpush1.msra.mxu1 %v809_v4  ;;  %1665 = vmatpush1.msra.mxu0 %v937_v5  ;;  %v893_v2 = vld [vmem:[#allocation6 + $0x3d0] sm:$0xff]  ;;  %v890_v4 = vld [vmem:[#allocation6 + $0x3b8] sm:$0xff] }
 0x188   : > { %1595 = vmatprep.subr.mxu1 %v806_v6  ;;  %1666 = vmatprep.subr.mxu0 %v934_v7  ;;  %v1021_v3 = vld [vmem:[#allocation6 + $0x7d0] sm:$0xff]  ;;  %v1018_v5 = vld [vmem:[#allocation6 + $0x7b8] sm:$0xff] }
 0x189   : > { %1596 = vmatpush1.msra.mxu1 %v805_v8  ;;  %1667 = vmatpush1.msra.mxu0 %v933_v9  ;;  %v889_v6 = vld [vmem:[#allocation6 + $0x3b0] sm:$0xff]  ;;  %v886_v8 = vld [vmem:[#allocation6 + $0x398] sm:$0xff] }
 0x18a   : > { %1597 = vmatprep.subr.mxu1 %v802_v10  ;;  %1668 = vmatprep.subr.mxu0 %v930_v11  ;;  %v1017_v7 = vld [vmem:[#allocation6 + $0x7b0] sm:$0xff]  ;;  %v1014_v9 = vld [vmem:[#allocation6 + $0x798] sm:$0xff] }
 0x18b   : > { %1598 = vmatpush1.msra.mxu1 %v801_v13  ;;  %1669 = vmatpush1.msra.mxu0 %v929_v14  ;;  %v885_v10 = vld [vmem:[#allocation6 + $0x390] sm:$0xff]  ;;  %v882_v13 = vld [vmem:[#allocation6 + $0x378] sm:$0xff] }
 0x18c   : > { %1599 = vmatprep.subr.mxu1 %v798_v16  ;;  %1670 = vmatprep.subr.mxu0 %v926_v17  ;;  %v1013_v11 = vld [vmem:[#allocation6 + $0x790] sm:$0xff]  ;;  %v1010_v14 = vld [vmem:[#allocation6 + $0x778] sm:$0xff] }
 0x18d   : > { %1600 = vmatpush1.msra.mxu1 %v797_v19  ;;  %1671 = vmatpush1.msra.mxu0 %v925_v20  ;;  %v881_v16 = vld [vmem:[#allocation6 + $0x370] sm:$0xff]  ;;  %v878_v19 = vld [vmem:[#allocation6 + $0x358] sm:$0xff] }
 0x18e   : > { %1601 = vmatprep.subr.mxu1 %v794_v33  ;;  %1672 = vmatprep.subr.mxu0 %v922_v21  ;;  %v1009_v17 = vld [vmem:[#allocation6 + $0x770] sm:$0xff]  ;;  %v1006_v20 = vld [vmem:[#allocation6 + $0x758] sm:$0xff] }
 0x18f   : > { %1602 = vmatpush1.msra.mxu1 %v793_v24  ;;  %1673 = vmatpush1.msra.mxu0 %v921_v25  ;;  %v877_v33 = vld [vmem:[#allocation6 + $0x350] sm:$0xff]  ;;  %v874_v24 = vld [vmem:[#allocation6 + $0x338] sm:$0xff] }
 0x190   : > { %1603 = vmatprep.subr.mxu1 %v790_v27  ;;  %1674 = vmatprep.subr.mxu0 %v918_v29  ;;  %v1005_v21 = vld [vmem:[#allocation6 + $0x750] sm:$0xff]  ;;  %v1002_v25 = vld [vmem:[#allocation6 + $0x738] sm:$0xff] }
 0x191   : > { %1604 = vmatpush1.msra.mxu1 %v789_v35  ;;  %1675 = vmatpush1.msra.mxu0 %v917_v36  ;;  %v873_v27 = vld [vmem:[#allocation6 + $0x330] sm:$0xff]  ;;  %v870_v35 = vld [vmem:[#allocation6 + $0x318] sm:$0xff] }
 0x192   : > { %1605 = vmatprep.subr.mxu1 %v786_v37  ;;  %1676 = vmatprep.subr.mxu0 %v914_v41  ;;  %v1001_v29 = vld [vmem:[#allocation6 + $0x730] sm:$0xff]  ;;  %v998_v36 = vld [vmem:[#allocation6 + $0x718] sm:$0xff] }
 0x193   : > { %1606 = vmatpush1.msra.mxu1 %v785_v43  ;;  %1677 = vmatpush1.msra.mxu0 %v913_v45  ;;  %v869_v37 = vld [vmem:[#allocation6 + $0x310] sm:$0xff]  ;;  %v866_v43 = vld [vmem:[#allocation6 + $0x2f8] sm:$0xff] }
 0x194   : > { %1607 = vmatprep.subr.mxu1 %v782_v47  ;;  %1678 = vmatprep.subr.mxu0 %v910_v48  ;;  %v997_v41 = vld [vmem:[#allocation6 + $0x710] sm:$0xff]  ;;  %v994_v45 = vld [vmem:[#allocation6 + $0x6f8] sm:$0xff] }
 0x195   : > { %1608 = vmatpush1.msra.mxu1 %v781_v49  ;;  %1679 = vmatpush1.msra.mxu0 %v909_v51  ;;  %v865_v47 = vld [vmem:[#allocation6 + $0x2f0] sm:$0xff]  ;;  %v862_v49 = vld [vmem:[#allocation6 + $0x2d8] sm:$0xff] }
 0x196   : > { %1609 = vmatprep.subr.mxu1 %v778_v52  ;;  %1680 = vmatprep.subr.mxu0 %v906_v54  ;;  %v993_v48 = vld [vmem:[#allocation6 + $0x6f0] sm:$0xff]  ;;  %v990_v51 = vld [vmem:[#allocation6 + $0x6d8] sm:$0xff] }
 0x197   : > { %1610 = vmatpush1.msra.mxu1 %v777_v55  ;;  %1681 = vmatpush1.msra.mxu0 %v905_v57  ;;  %v861_v52 = vld [vmem:[#allocation6 + $0x2d0] sm:$0xff]  ;;  %v858_v55 = vld [vmem:[#allocation6 + $0x2b8] sm:$0xff] }
 0x198   : > { %1611 = vmatprep.subr.mxu1 %v774_v42  ;;  %1682 = vmatprep.subr.mxu0 %v902_v44  ;;  %v989_v54 = vld [vmem:[#allocation6 + $0x6d0] sm:$0xff]  ;;  %v986_v57 = vld [vmem:[#allocation6 + $0x6b8] sm:$0xff] }
 0x199   : > { %1612 = vmatpush1.msra.mxu1 %v773_v59  ;;  %1683 = vmatpush1.msra.mxu0 %v901_v60  ;;  %v857_v42 = vld [vmem:[#allocation6 + $0x2b0] sm:$0xff]  ;;  %v854_v59 = vld [vmem:[#allocation6 + $0x298] sm:$0xff] }
 0x19a   : > { %1613 = vmatprep.subr.mxu1 %v898_v53  ;;  %1684 = vmatprep.subr.mxu0 %v1026_v56  ;;  %v985_v44 = vld [vmem:[#allocation6 + $0x6b0] sm:$0xff]  ;;  %v982_v60 = vld [vmem:[#allocation6 + $0x698] sm:$0xff] }
 0x19b   : > { %1614 = vmatpush2.msra.mxu1 %v897_v61  ;;  %1685 = vmatpush2.msra.mxu0 %v1025_v62  ;;  %v853_v53 = vld [vmem:[#allocation6 + $0x290] sm:$0xff]  ;;  %v850_v61 = vld [vmem:[#allocation6 + $0x278] sm:$0xff] }
 0x19c   : > { %1615 = vmatprep.subr.mxu1 %v894_v63  ;;  %1686 = vmatprep.subr.mxu0 %v1022_v1  ;;  %v981_v56 = vld [vmem:[#allocation6 + $0x690] sm:$0xff]  ;;  %v978_v62 = vld [vmem:[#allocation6 + $0x678] sm:$0xff] }
 0x19d   : > { %1616 = vmatpush2.msra.mxu1 %v893_v2  ;;  %1687 = vmatpush2.msra.mxu0 %v1021_v3  ;;  %v849_v63 = vld [vmem:[#allocation6 + $0x270] sm:$0xff]  ;;  %v846_v2 = vld [vmem:[#allocation6 + $0x258] sm:$0xff] }
 0x19e   : > { %1617 = vmatprep.subr.mxu1 %v890_v4  ;;  %1688 = vmatprep.subr.mxu0 %v1018_v5  ;;  %v977_v1 = vld [vmem:[#allocation6 + $0x670] sm:$0xff]  ;;  %v974_v3 = vld [vmem:[#allocation6 + $0x658] sm:$0xff] }
 0x19f   : > { %1618 = vmatpush2.msra.mxu1 %v889_v6  ;;  %1689 = vmatpush2.msra.mxu0 %v1017_v7  ;;  %v845_v4 = vld [vmem:[#allocation6 + $0x250] sm:$0xff]  ;;  %v842_v6 = vld [vmem:[#allocation6 + $0x238] sm:$0xff] }
 0x1a0   : > { %1619 = vmatprep.subr.mxu1 %v886_v8  ;;  %1690 = vmatprep.subr.mxu0 %v1014_v9  ;;  %v973_v5 = vld [vmem:[#allocation6 + $0x650] sm:$0xff]  ;;  %v970_v7 = vld [vmem:[#allocation6 + $0x638] sm:$0xff] }
 0x1a1   : > { %1620 = vmatpush2.msra.mxu1 %v885_v10  ;;  %1691 = vmatpush2.msra.mxu0 %v1013_v11  ;;  %v841_v8 = vld [vmem:[#allocation6 + $0x230] sm:$0xff]  ;;  %v838_v10 = vld [vmem:[#allocation6 + $0x218] sm:$0xff] }
 0x1a2   : > { %1621 = vmatprep.subr.mxu1 %v882_v13  ;;  %1692 = vmatprep.subr.mxu0 %v1010_v14  ;;  %v969_v9 = vld [vmem:[#allocation6 + $0x630] sm:$0xff]  ;;  %v966_v11 = vld [vmem:[#allocation6 + $0x618] sm:$0xff] }
 0x1a3   : > { %1622 = vmatpush2.msra.mxu1 %v881_v16  ;;  %1693 = vmatpush2.msra.mxu0 %v1009_v17  ;;  %v837_v13 = vld [vmem:[#allocation6 + $0x210] sm:$0xff]  ;;  %v1090_v16 = vld [vmem:[#allocation6 + $0x9f8] sm:$0xff] }
 0x1a4   : > { %1623 = vmatprep.subr.mxu1 %v878_v19  ;;  %1694 = vmatprep.subr.mxu0 %v1006_v20  ;;  %v965_v14 = vld [vmem:[#allocation6 + $0x610] sm:$0xff]  ;;  %v1218_v17 = vld [vmem:[#allocation6 + $0xdf8] sm:$0xff] }
 0x1a5   : > { %1624 = vmatpush2.msra.mxu1 %v877_v33  ;;  %1695 = vmatpush2.msra.mxu0 %v1005_v21  ;;  %v1089_v19 = vld [vmem:[#allocation6 + $0x9f0] sm:$0xff]  ;;  %v1086_v33 = vld [vmem:[#allocation6 + $0x9d8] sm:$0xff] }
 0x1a6   : > { %1625 = vmatprep.subr.mxu1 %v874_v24  ;;  %1696 = vmatprep.subr.mxu0 %v1002_v25  ;;  %v1217_v20 = vld [vmem:[#allocation6 + $0xdf0] sm:$0xff]  ;;  %v1214_v21 = vld [vmem:[#allocation6 + $0xdd8] sm:$0xff] }
 0x1a7   : > { %1626 = vmatpush2.msra.mxu1 %v873_v27  ;;  %1697 = vmatpush2.msra.mxu0 %v1001_v29  ;;  %v1085_v24 = vld [vmem:[#allocation6 + $0x9d0] sm:$0xff]  ;;  %v1078_v27 = vld [vmem:[#allocation6 + $0x998] sm:$0xff] }
 0x1a8   : > { %1627 = vmatprep.subr.mxu1 %v870_v35  ;;  %1698 = vmatprep.subr.mxu0 %v998_v36  ;;  %v1213_v25 = vld [vmem:[#allocation6 + $0xdd0] sm:$0xff]  ;;  %v1206_v29 = vld [vmem:[#allocation6 + $0xd98] sm:$0xff] }
 0x1a9   : > { %1628 = vmatpush2.msra.mxu1 %v869_v37  ;;  %1699 = vmatpush2.msra.mxu0 %v997_v41  ;;  %v1074_v35 = vld [vmem:[#allocation6 + $0x978] sm:$0xff]  ;;  %v1201_v36 = vld [vmem:[#allocation6 + $0xd70] sm:$0xff] }
 0x1aa   : > { %1629 = vmatprep.subr.mxu1 %v866_v43  ;;  %1700 = vmatprep.subr.mxu0 %v994_v45  ;;  %v1070_v37 = vld [vmem:[#allocation6 + $0x958] sm:$0xff]  ;;  %v1069_v43 = vld [vmem:[#allocation6 + $0x950] sm:$0xff] }
 0x1ab   : > { %1630 = vmatpush2.msra.mxu1 %v865_v47  ;;  %1701 = vmatpush2.msra.mxu0 %v993_v48  ;;  %v1198_v41 = vld [vmem:[#allocation6 + $0xd58] sm:$0xff]  ;;  %v1197_v45 = vld [vmem:[#allocation6 + $0xd50] sm:$0xff] }
 0x1ac   : > { %1631 = vmatprep.subr.mxu1 %v862_v49  ;;  %1702 = vmatprep.subr.mxu0 %v990_v51  ;;  %v1066_v47 = vld [vmem:[#allocation6 + $0x938] sm:$0xff]  ;;  %v1065_v49 = vld [vmem:[#allocation6 + $0x930] sm:$0xff] }
 0x1ad   : > { %1632 = vmatpush2.msra.mxu1 %v861_v52  ;;  %1703 = vmatpush2.msra.mxu0 %v989_v54  ;;  %v1194_v48 = vld [vmem:[#allocation6 + $0xd38] sm:$0xff]  ;;  %v1193_v51 = vld [vmem:[#allocation6 + $0xd30] sm:$0xff] }
 0x1ae   : > { %1633 = vmatprep.subr.mxu1 %v858_v55  ;;  %1704 = vmatprep.subr.mxu0 %v986_v57  ;;  %v1062_v52 = vld [vmem:[#allocation6 + $0x918] sm:$0xff]  ;;  %v1061_v55 = vld [vmem:[#allocation6 + $0x910] sm:$0xff] }
 0x1af   : > { %1634 = vmatpush2.msra.mxu1 %v857_v42  ;;  %1705 = vmatpush2.msra.mxu0 %v985_v44  ;;  %v1190_v54 = vld [vmem:[#allocation6 + $0xd18] sm:$0xff]  ;;  %v1189_v57 = vld [vmem:[#allocation6 + $0xd10] sm:$0xff] }
 0x1b0   : > { %1635 = vmatprep.subr.mxu1 %v854_v59  ;;  %1706 = vmatprep.subr.mxu0 %v982_v60  ;;  %v1058_v42 = vld [vmem:[#allocation6 + $0x8f8] sm:$0xff]  ;;  %v1057_v59 = vld [vmem:[#allocation6 + $0x8f0] sm:$0xff] }
 0x1b1   : > { %1636 = vmatpush2.msra.mxu1 %v853_v53  ;;  %1707 = vmatpush2.msra.mxu0 %v981_v56  ;;  %v1186_v44 = vld [vmem:[#allocation6 + $0xcf8] sm:$0xff]  ;;  %v1185_v60 = vld [vmem:[#allocation6 + $0xcf0] sm:$0xff] }
 0x1b2   : > { %1637 = vmatprep.subr.mxu1 %v850_v61  ;;  %1708 = vmatprep.subr.mxu0 %v978_v62  ;;  %v1054_v53 = vld [vmem:[#allocation6 + $0x8d8] sm:$0xff]  ;;  %v1053_v61 = vld [vmem:[#allocation6 + $0x8d0] sm:$0xff] }
 0x1b3   : > { %1638 = vmatpush2.msra.mxu1 %v849_v63  ;;  %1709 = vmatpush2.msra.mxu0 %v977_v1  ;;  %v1182_v56 = vld [vmem:[#allocation6 + $0xcd8] sm:$0xff]  ;;  %v1181_v62 = vld [vmem:[#allocation6 + $0xcd0] sm:$0xff] }
 0x1b4   : > { %1639 = vmatprep.subr.mxu1 %v846_v2  ;;  %1710 = vmatprep.subr.mxu0 %v974_v3  ;;  %v1050_v63 = vld [vmem:[#allocation6 + $0x8b8] sm:$0xff]  ;;  %v1049_v2 = vld [vmem:[#allocation6 + $0x8b0] sm:$0xff] }
 0x1b5   : > { %1640 = vmatpush2.msra.mxu1 %v845_v4  ;;  %1711 = vmatpush2.msra.mxu0 %v973_v5  ;;  %v1178_v1 = vld [vmem:[#allocation6 + $0xcb8] sm:$0xff]  ;;  %v1177_v3 = vld [vmem:[#allocation6 + $0xcb0] sm:$0xff] }
 0x1b6   : > { %1641 = vmatprep.subr.mxu1 %v842_v6  ;;  %1712 = vmatprep.subr.mxu0 %v970_v7  ;;  %v1046_v4 = vld [vmem:[#allocation6 + $0x898] sm:$0xff]  ;;  %v1045_v6 = vld [vmem:[#allocation6 + $0x890] sm:$0xff] }
 0x1b7   : > { %1642 = vmatpush2.msra.mxu1 %v841_v8  ;;  %1713 = vmatpush2.msra.mxu0 %v969_v9  ;;  %v1174_v5 = vld [vmem:[#allocation6 + $0xc98] sm:$0xff]  ;;  %v1173_v7 = vld [vmem:[#allocation6 + $0xc90] sm:$0xff] }
 0x1b8   : > { %1643 = vmatprep.subr.mxu1 %v838_v10  ;;  %1714 = vmatprep.subr.mxu0 %v966_v11  ;;  %v1042_v8 = vld [vmem:[#allocation6 + $0x878] sm:$0xff]  ;;  %v1041_v10 = vld [vmem:[#allocation6 + $0x870] sm:$0xff] }
 0x1b9   : > { %1644 = vmatpush2.msra.mxu1 %v837_v13  ;;  %1715 = vmatpush2.msra.mxu0 %v965_v14  ;;  %v1170_v9 = vld [vmem:[#allocation6 + $0xc78] sm:$0xff]  ;;  %v1169_v11 = vld [vmem:[#allocation6 + $0xc70] sm:$0xff] }
 0x1ba   : > { %1646 = vmatmul.mubr.f32.vlgmr.msra.gmra.mxu1 %v763_v46  ;;  %1717 = vmatmul.mubr.f32.vlgmr.msra.gmra.mxu0 %v765_v58  ;;  %v1210_v46 = vld [vmem:[#allocation6 + $0xdb8] sm:$0xff]  ;;  %v1209_v58 = vld [vmem:[#allocation6 + $0xdb0] sm:$0xff] }
 0x1bb   : > { %1723 = vmatprep.subr.mxu1 %v1090_v16  ;;  %1794 = vmatprep.subr.mxu0 %v1218_v17  ;;  %v1038_v13 = vld [vmem:[#allocation6 + $0x858] sm:$0xff]  ;;  %v1037_v16 = vld [vmem:[#allocation6 + $0x850] sm:$0xff] }
 0x1bc   : > { %1724 = vmatpush1.msra.mxu1 %v1089_v19  ;;  %1787 = vmatprep.mubr.f32.mxu1 %v768_v26  ;;  %v1205_v26 = vld [vmem:[#allocation6 + $0xd90] sm:$0xff]  ;;  %v1166_v14 = vld [vmem:[#allocation6 + $0xc58] sm:$0xff] }
 0x1bd   : > { %1795 = vmatpush1.msra.mxu0 %v1217_v20  ;;  %2317 = vmatprep.mubr.msk.f32.mxu0 %vm1293_vm1, %v770_v23  ;;  %v1073_v23 = vld [vmem:[#allocation6 + $0x970] sm:$0xff]  ;;  %v1034_v19 = vld [vmem:[#allocation6 + $0x838] sm:$0xff] }
 0x1be   : > { %1725 = vmatprep.subr.mxu1 %v1086_v33  ;;  %1796 = vmatprep.subr.mxu0 %v1214_v21  ;;  %v1165_v17 = vld [vmem:[#allocation6 + $0xc50] sm:$0xff]  ;;  %v1162_v20 = vld [vmem:[#allocation6 + $0xc38] sm:$0xff] }
 0x1bf   : > { %1726 = vmatpush1.msra.mxu1 %v1085_v24  ;;  %1797 = vmatpush1.msra.mxu0 %v1213_v25  ;;  %v1033_v33 = vld [vmem:[#allocation6 + $0x830] sm:$0xff]  ;;  %v1030_v24 = vld [vmem:[#allocation6 + $0x818] sm:$0xff] }
 0x1c0   : > { %1727 = vmatprep.subr.mxu1 %v1082_v40  ;;  %1798 = vmatprep.subr.mxu0 %v1210_v46  ;;  %v1161_v21 = vld [vmem:[#allocation6 + $0xc30] sm:$0xff]  ;;  %v1158_v25 = vld [vmem:[#allocation6 + $0xc18] sm:$0xff] }
 0x1c1   : > { %1728 = vmatpush1.msra.mxu1 %v1081_v50  ;;  %1799 = vmatpush1.msra.mxu0 %v1209_v58  ;;  %v1029_v40 = vld [vmem:[#allocation6 + $0x810] sm:$0xff]  ;;  %v1154_v50 = vld [vmem:[#allocation6 + $0xbf8] sm:$0xff] }
 0x1c2   : > { %1729 = vmatprep.subr.mxu1 %v1078_v27  ;;  %1800 = vmatprep.subr.mxu0 %v1206_v29  ;;  %v1157_v46 = vld [vmem:[#allocation6 + $0xc10] sm:$0xff]  ;;  %v1270_v58 = vld [vmem:[#allocation6 + $0xf98] sm:$0xff] }
 0x1c3   : > { %1730 = vmatpush1.msra.mxu1 %v1077_v15  ;;  %1801 = vmatpush1.msra.mxu0 %v1205_v26  ;;  %v1153_v27 = vld [vmem:[#allocation6 + $0xbf0] sm:$0xff]  ;;  %v1150_v15 = vld [vmem:[#allocation6 + $0xbd8] sm:$0xff] }
 0x1c4   : > { %1731 = vmatprep.subr.mxu1 %v1074_v35  ;;  %1802 = vmatprep.subr.mxu0 %v1202_v12  ;;  %v1269_v29 = vld [vmem:[#allocation6 + $0xf90] sm:$0xff]  ;;  %v1266_v26 = vld [vmem:[#allocation6 + $0xf78] sm:$0xff] }
 0x1c5   : > { %1732 = vmatpush1.msra.mxu1 %v1073_v23  ;;  %1803 = vmatpush1.msra.mxu0 %v1201_v36  ;;  %v1149_v35 = vld [vmem:[#allocation6 + $0xbd0] sm:$0xff]  ;;  %v1146_v23 = vld [vmem:[#allocation6 + $0xbb8] sm:$0xff] }
 0x1c6   : > { %1733 = vmatprep.subr.mxu1 %v1070_v37  ;;  %1804 = vmatprep.subr.mxu0 %v1198_v41  ;;  %v1265_v12 = vld [vmem:[#allocation6 + $0xf70] sm:$0xff]  ;;  %v1262_v36 = vld [vmem:[#allocation6 + $0xf58] sm:$0xff] }
 0x1c7   : > { %1734 = vmatpush1.msra.mxu1 %v1069_v43  ;;  %1805 = vmatpush1.msra.mxu0 %v1197_v45  ;;  %v1145_v37 = vld [vmem:[#allocation6 + $0xbb0] sm:$0xff]  ;;  %v1142_v43 = vld [vmem:[#allocation6 + $0xb98] sm:$0xff] }
 0x1c8   : > { %1735 = vmatprep.subr.mxu1 %v1066_v47  ;;  %1806 = vmatprep.subr.mxu0 %v1194_v48  ;;  %v1261_v41 = vld [vmem:[#allocation6 + $0xf50] sm:$0xff]  ;;  %v1258_v45 = vld [vmem:[#allocation6 + $0xf38] sm:$0xff] }
 0x1c9   : > { %1736 = vmatpush1.msra.mxu1 %v1065_v49  ;;  %1807 = vmatpush1.msra.mxu0 %v1193_v51  ;;  %v1141_v47 = vld [vmem:[#allocation6 + $0xb90] sm:$0xff]  ;;  %v1138_v49 = vld [vmem:[#allocation6 + $0xb78] sm:$0xff] }
 0x1ca   : > { %1737 = vmatprep.subr.mxu1 %v1062_v52  ;;  %1808 = vmatprep.subr.mxu0 %v1190_v54  ;;  %v1257_v48 = vld [vmem:[#allocation6 + $0xf30] sm:$0xff]  ;;  %v1254_v51 = vld [vmem:[#allocation6 + $0xf18] sm:$0xff] }
 0x1cb   : > { %1738 = vmatpush1.msra.mxu1 %v1061_v55  ;;  %1809 = vmatpush1.msra.mxu0 %v1189_v57  ;;  %v1137_v52 = vld [vmem:[#allocation6 + $0xb70] sm:$0xff]  ;;  %v1134_v55 = vld [vmem:[#allocation6 + $0xb58] sm:$0xff] }
 0x1cc   : > { %1739 = vmatprep.subr.mxu1 %v1058_v42  ;;  %1810 = vmatprep.subr.mxu0 %v1186_v44  ;;  %v1253_v54 = vld [vmem:[#allocation6 + $0xf10] sm:$0xff]  ;;  %v1250_v57 = vld [vmem:[#allocation6 + $0xef8] sm:$0xff] }
 0x1cd   : > { %1740 = vmatpush1.msra.mxu1 %v1057_v59  ;;  %1811 = vmatpush1.msra.mxu0 %v1185_v60  ;;  %v1133_v42 = vld [vmem:[#allocation6 + $0xb50] sm:$0xff]  ;;  %v1130_v59 = vld [vmem:[#allocation6 + $0xb38] sm:$0xff] }
 0x1ce   : > { %1741 = vmatprep.subr.mxu1 %v1054_v53  ;;  %1812 = vmatprep.subr.mxu0 %v1182_v56  ;;  %v1249_v44 = vld [vmem:[#allocation6 + $0xef0] sm:$0xff]  ;;  %v1246_v60 = vld [vmem:[#allocation6 + $0xed8] sm:$0xff] }
 0x1cf   : > { %1742 = vmatpush1.msra.mxu1 %v1053_v61  ;;  %1813 = vmatpush1.msra.mxu0 %v1181_v62  ;;  %v1129_v53 = vld [vmem:[#allocation6 + $0xb30] sm:$0xff]  ;;  %v1126_v61 = vld [vmem:[#allocation6 + $0xb18] sm:$0xff] }
 0x1d0   : > { %1743 = vmatprep.subr.mxu1 %v1050_v63  ;;  %1814 = vmatprep.subr.mxu0 %v1178_v1  ;;  %v1245_v56 = vld [vmem:[#allocation6 + $0xed0] sm:$0xff]  ;;  %v1242_v62 = vld [vmem:[#allocation6 + $0xeb8] sm:$0xff] }
 0x1d1   : > { %1744 = vmatpush1.msra.mxu1 %v1049_v2  ;;  %1815 = vmatpush1.msra.mxu0 %v1177_v3  ;;  %v1125_v63 = vld [vmem:[#allocation6 + $0xb10] sm:$0xff]  ;;  %v1122_v2 = vld [vmem:[#allocation6 + $0xaf8] sm:$0xff] }
 0x1d2   : > { %1745 = vmatprep.subr.mxu1 %v1046_v4  ;;  %1816 = vmatprep.subr.mxu0 %v1174_v5  ;;  %v1241_v1 = vld [vmem:[#allocation6 + $0xeb0] sm:$0xff]  ;;  %v1238_v3 = vld [vmem:[#allocation6 + $0xe98] sm:$0xff] }
 0x1d3   : > { %1746 = vmatpush1.msra.mxu1 %v1045_v6  ;;  %1817 = vmatpush1.msra.mxu0 %v1173_v7  ;;  %v1121_v4 = vld [vmem:[#allocation6 + $0xaf0] sm:$0xff]  ;;  %v1118_v6 = vld [vmem:[#allocation6 + $0xad8] sm:$0xff] }
 0x1d4   : > { %1747 = vmatprep.subr.mxu1 %v1042_v8  ;;  %1818 = vmatprep.subr.mxu0 %v1170_v9  ;;  %v1237_v5 = vld [vmem:[#allocation6 + $0xe90] sm:$0xff]  ;;  %v1234_v7 = vld [vmem:[#allocation6 + $0xe78] sm:$0xff] }
 0x1d5   : > { %1748 = vmatpush1.msra.mxu1 %v1041_v10  ;;  %1819 = vmatpush1.msra.mxu0 %v1169_v11  ;;  %v1117_v8 = vld [vmem:[#allocation6 + $0xad0] sm:$0xff]  ;;  %v1114_v10 = vld [vmem:[#allocation6 + $0xab8] sm:$0xff] }
 0x1d6   : > { %1749 = vmatprep.subr.mxu1 %v1038_v13  ;;  %1820 = vmatprep.subr.mxu0 %v1166_v14  ;;  %v1233_v9 = vld [vmem:[#allocation6 + $0xe70] sm:$0xff]  ;;  %v1230_v11 = vld [vmem:[#allocation6 + $0xe58] sm:$0xff] }
 0x1d7   : > { %1750 = vmatpush1.msra.mxu1 %v1037_v16  ;;  %1821 = vmatpush1.msra.mxu0 %v1165_v17  ;;  %v1113_v13 = vld [vmem:[#allocation6 + $0xab0] sm:$0xff]  ;;  %v1110_v16 = vld [vmem:[#allocation6 + $0xa98] sm:$0xff] }
 0x1d8   : > { %1751 = vmatprep.subr.mxu1 %v1034_v19  ;;  %1822 = vmatprep.subr.mxu0 %v1162_v20  ;;  %v1229_v14 = vld [vmem:[#allocation6 + $0xe50] sm:$0xff]  ;;  %v1226_v17 = vld [vmem:[#allocation6 + $0xe38] sm:$0xff] }
 0x1d9   : > { %1752 = vmatpush1.msra.mxu1 %v1033_v33  ;;  %1823 = vmatpush1.msra.mxu0 %v1161_v21  ;;  %v1109_v19 = vld [vmem:[#allocation6 + $0xa90] sm:$0xff]  ;;  %v1106_v33 = vld [vmem:[#allocation6 + $0xa78] sm:$0xff] }
 0x1da   : > { %1753 = vmatprep.subr.mxu1 %v1030_v24  ;;  %1824 = vmatprep.subr.mxu0 %v1158_v25  ;;  %v1225_v20 = vld [vmem:[#allocation6 + $0xe30] sm:$0xff]  ;;  %v1222_v21 = vld [vmem:[#allocation6 + $0xe18] sm:$0xff] }
 0x1db   : > { %1754 = vmatpush1.msra.mxu1 %v1029_v40  ;;  %1825 = vmatpush1.msra.mxu0 %v1157_v46  ;;  %v1105_v24 = vld [vmem:[#allocation6 + $0xa70] sm:$0xff]  ;;  %v1102_v40 = vld [vmem:[#allocation6 + $0xa58] sm:$0xff] }
 0x1dc   : > { %1755 = vmatprep.subr.mxu1 %v1154_v50  ;;  %1832 = vmatprep.subr.mxu0 %v1270_v58  ;;  %v1221_v25 = vld [vmem:[#allocation6 + $0xe10] sm:$0xff]  ;;  %v1098_v58 = vld [vmem:[#allocation6 + $0xa38] sm:$0xff] }
 0x1dd   : > { %1756 = vmatpush2.msra.mxu1 %v1153_v27  ;;  %1833 = vmatpush2.msra.mxu0 %v1269_v29  ;;  %v1101_v46 = vld [vmem:[#allocation6 + $0xa50] sm:$0xff] }
 0x1de   : > { %1757 = vmatprep.subr.mxu1 %v1150_v15  ;;  %1834 = vmatprep.subr.mxu0 %v1266_v26  ;;  %v1900_v50 = vld [vmem:[%s3188_s5 + $0xf8] sm:$0xff]  ;;  %v1899_v15 = vld [vmem:[%s3188_s5 + $0xf0] sm:$0xff]  ;;  %v1094_v26 = vld [vmem:[#allocation6 + $0xa18] sm:$0xff] }
 0x1df   : > { %1758 = vmatpush2.msra.mxu1 %v1149_v35  ;;  %1835 = vmatpush2.msra.mxu0 %v1265_v12  ;;  %v1884_v27 = vld [vmem:[%s3188_s5 + $0x78] sm:$0xff]  ;;  %v1883_v35 = vld [vmem:[%s3188_s5 + $0x70] sm:$0xff] }
 0x1e0   : > { %1759 = vmatprep.subr.mxu1 %v1146_v23  ;;  %1836 = vmatprep.subr.mxu0 %v1262_v36  ;;  %v1097_v29 = vld [vmem:[#allocation6 + $0xa30] sm:$0xff]  ;;  %v1897_v23 = vld [vmem:[%s3188_s5 + $0xe0] sm:$0xff] }
 0x1e1   : > { %1760 = vmatpush2.msra.mxu1 %v1145_v37  ;;  %1837 = vmatpush2.msra.mxu0 %v1261_v41  ;;  %v1093_v12 = vld [vmem:[#allocation6 + $0xa10] sm:$0xff]  ;;  %v1881_v36 = vld [vmem:[%s3188_s5 + $0x60] sm:$0xff] }
 0x1e2   : > { %1761 = vmatprep.subr.mxu1 %v1142_v43  ;;  %1838 = vmatprep.subr.mxu0 %v1258_v45  ;;  %v1896_v37 = vld [vmem:[%s3188_s5 + $0xd8] sm:$0xff]  ;;  %v1895_v43 = vld [vmem:[%s3188_s5 + $0xd0] sm:$0xff] }
 0x1e3   : > { %1762 = vmatpush2.msra.mxu1 %v1141_v47  ;;  %1839 = vmatpush2.msra.mxu0 %v1257_v48  ;;  %v1880_v41 = vld [vmem:[%s3188_s5 + $0x58] sm:$0xff]  ;;  %v1915_v45 = vld [vmem:[%s3188_s5 + $0x170] sm:$0xff]  ;;  %v1894_v47 = vld [vmem:[%s3188_s5 + $0xc8] sm:$0xff] }
 0x1e4   : > { %1763 = vmatprep.subr.mxu1 %v1138_v49  ;;  %1840 = vmatprep.subr.mxu0 %v1254_v51  ;;  %v1878_v48 = vld [vmem:[%s3188_s5 + $0x48] sm:$0xff]  ;;  %v1893_v51 = vld [vmem:[%s3188_s5 + $0xc0] sm:$0xff] }
 0x1e5   : > { %1764 = vmatpush2.msra.mxu1 %v1137_v52  ;;  %1841 = vmatpush2.msra.mxu0 %v1253_v54  ;;  %v1914_v49 = vld [vmem:[%s3188_s5 + $0x168] sm:$0xff]  ;;  %v1877_v52 = vld [vmem:[%s3188_s5 + $0x40] sm:$0xff] }
 0x1e6   : > { %1765 = vmatprep.subr.mxu1 %v1134_v55  ;;  %1842 = vmatprep.subr.mxu0 %v1250_v57  ;;  %v1913_v54 = vld [vmem:[%s3188_s5 + $0x160] sm:$0xff]  ;;  %v1892_v55 = vld [vmem:[%s3188_s5 + $0xb8] sm:$0xff] }
 0x1e7   : > { %1766 = vmatpush2.msra.mxu1 %v1133_v42  ;;  %1843 = vmatpush2.msra.mxu0 %v1249_v44  ;;  %v1876_v57 = vld [vmem:[%s3188_s5 + $0x38] sm:$0xff]  ;;  %v1891_v44 = vld [vmem:[%s3188_s5 + $0xb0] sm:$0xff] }
 0x1e8   : > { %1767 = vmatprep.subr.mxu1 %v1130_v59  ;;  %1844 = vmatprep.subr.mxu0 %v1246_v60  ;;  %v1912_v42 = vld [vmem:[%s3188_s5 + $0x158] sm:$0xff]  ;;  %v1875_v59 = vld [vmem:[%s3188_s5 + $0x30] sm:$0xff] }
 0x1e9   : > { %1768 = vmatpush2.msra.mxu1 %v1129_v53  ;;  %1845 = vmatpush2.msra.mxu0 %v1245_v56  ;;  %v1911_v60 = vld [vmem:[%s3188_s5 + $0x150] sm:$0xff]  ;;  %v1890_v53 = vld [vmem:[%s3188_s5 + $0xa8] sm:$0xff] }
 0x1ea   : > { %1769 = vmatprep.subr.mxu1 %v1126_v61  ;;  %1846 = vmatprep.subr.mxu0 %v1242_v62  ;;  %v1874_v56 = vld [vmem:[%s3188_s5 + $0x28] sm:$0xff]  ;;  %v1889_v62 = vld [vmem:[%s3188_s5 + $0xa0] sm:$0xff] }
 0x1eb   : > { %1770 = vmatpush2.msra.mxu1 %v1125_v63  ;;  %1847 = vmatpush2.msra.mxu0 %v1241_v1  ;;  %v1910_v61 = vld [vmem:[%s3188_s5 + $0x148] sm:$0xff]  ;;  %v1873_v63 = vld [vmem:[%s3188_s5 + $0x20] sm:$0xff] }
 0x1ec   : > { %1771 = vmatprep.subr.mxu1 %v1122_v2  ;;  %1848 = vmatprep.subr.mxu0 %v1238_v3  ;;  %v1909_v1 = vld [vmem:[%s3188_s5 + $0x140] sm:$0xff]  ;;  %v1888_v2 = vld [vmem:[%s3188_s5 + $0x98] sm:$0xff] }
 0x1ed   : > { %1772 = vmatpush2.msra.mxu1 %v1121_v4  ;;  %1849 = vmatpush2.msra.mxu0 %v1237_v5  ;;  %v1872_v3 = vld [vmem:[%s3188_s5 + $0x18] sm:$0xff]  ;;  %v1887_v5 = vld [vmem:[%s3188_s5 + $0x90] sm:$0xff] }
 0x1ee   : > { %1773 = vmatprep.subr.mxu1 %v1118_v6  ;;  %1850 = vmatprep.subr.mxu0 %v1234_v7  ;;  %v1908_v4 = vld [vmem:[%s3188_s5 + $0x138] sm:$0xff]  ;;  %v1871_v6 = vld [vmem:[%s3188_s5 + $0x10] sm:$0xff] }
 0x1ef   : > { %1774 = vmatpush2.msra.mxu1 %v1117_v8  ;;  %1851 = vmatpush2.msra.mxu0 %v1233_v9  ;;  %v1907_v7 = vld [vmem:[%s3188_s5 + $0x130] sm:$0xff]  ;;  %v1886_v8 = vld [vmem:[%s3188_s5 + $0x88] sm:$0xff] }
 0x1f0   : > { %1775 = vmatprep.subr.mxu1 %v1114_v10  ;;  %1852 = vmatprep.subr.mxu0 %v1230_v11  ;;  %v1870_v9 = vld [vmem:[%s3188_s5 + $0x8] sm:$0xff]  ;;  %v1885_v11 = vld [vmem:[%s3188_s5 + $0x80] sm:$0xff] }
 0x1f1   : > { %1776 = vmatpush2.msra.mxu1 %v1113_v13  ;;  %1853 = vmatpush2.msra.mxu0 %v1229_v14  ;;  %v1906_v10 = vld [vmem:[%s3188_s5 + $0x128] sm:$0xff]  ;;  %v1869_v13 = vld [vmem:[%s3188_s5] sm:$0xff] }
 0x1f2   : > { %1777 = vmatprep.subr.mxu1 %v1110_v16  ;;  %1854 = vmatprep.subr.mxu0 %v1226_v17  ;;  %v1905_v14 = vld [vmem:[%s3188_s5 + $0x120] sm:$0xff]  ;;  %v1904_v16 = vld [vmem:[%s3188_s5 + $0x118] sm:$0xff]  ;;  %v1903_v17 = vld [vmem:[%s3188_s5 + $0x110] sm:$0xff] }
 0x1f3   : > { %1778 = vmatpush2.msra.mxu1 %v1109_v19  ;;  %1855 = vmatpush2.msra.mxu0 %v1225_v20  ;;  %v1902_v19 = vld [vmem:[%s3188_s5 + $0x108] sm:$0xff]  ;;  %v1901_v20 = vld [vmem:[%s3188_s5 + $0x100] sm:$0xff] }
 0x1f4   : > { %1779 = vmatprep.subr.mxu1 %v1106_v33  ;;  %1856 = vmatprep.subr.mxu0 %v1222_v21  ;;  %v1931_v33 = vld [vmem:[%s3188_s5 + $0x1f0] sm:$0xf]  ;;  %v1930_v21 = vld [vmem:[%s3188_s5 + $0x1e8] sm:$0xff] }
 0x1f5   : > { %1780 = vmatpush2.msra.mxu1 %v1105_v24  ;;  %1857 = vmatpush2.msra.mxu0 %v1221_v25  ;;  %v1929_v24 = vld [vmem:[%s3188_s5 + $0x1e0] sm:$0xff]  ;;  %v1928_v25 = vld [vmem:[%s3188_s5 + $0x1d8] sm:$0xff] }
 0x1f6   : > { %1781 = vmatprep.subr.mxu1 %v1102_v40  ;;  %1859 = vmatmul.mubr.f32.vlgmr.msra.gmra.mxu0 %v769_v30  ;;  %v1882_v30 = vld [vmem:[%s3188_s5 + $0x68] sm:$0xff]  ;;  %v1927_v40 = vld [vmem:[%s3188_s5 + $0x1d0] sm:$0xff] }
 0x1f7   : > { %1782 = vmatpush2.msra.mxu1 %v1101_v46  ;;  %2325 = vmatprep.subr.mxu0 %v1900_v50  ;;  %v1926_v46 = vld [vmem:[%s3188_s5 + $0x1c8] sm:$0xff]  ;;  %v1925_v50 = vld [vmem:[%s3188_s5 + $0x1c0] sm:$0xff] }
 0x1f8   : > { %1783 = vmatprep.subr.mxu1 %v1098_v58  ;;  %2326 = vmatpush3.msra.mxu0 %v1884_v27  ;;  %v3098_v58 = vld [vmem:[#allocation7] sm:$0xf]  ;;  %v1363_v27 = vpop.f32.mrf.mxu0 }
 0x1f9   : > { %1784 = vmatpush2.msra.mxu1 %v1097_v29  ;;  %2327 = vmatprep.subr.mxu0 %v1899_v15  ;;  %v1276_v29 = vrot.slane %v3098_v58, %v437_v32  ;;  %v1923_v32 = vld [vmem:[%s3188_s5 + $0x1b0] sm:$0xff] }
 0x1fa   : > { %1785 = vmatprep.subr.mxu1 %v1094_v26  ;;  %2328 = vmatpush3.msra.mxu0 %v1883_v35  ;;  %v1280_v26 = vrot.slane %v3098_v58, %v441_v34  ;;  %v1365_v35 = vpop.f32.mrf.mxu0  ;;  %v1922_v34 = vld [vmem:[%s3188_s5 + $0x1a8] sm:$0xff] }
 0x1fb   : > { %1786 = vmatpush2.msra.mxu1 %v1093_v12  ;;  %2329 = vmatprep.subr.mxu0 %v1898_v22  ;;  %v1364_v12 = vadd.f32 %v1363_v27, %v1276_v29 }
 0x1fc   : > { %1788 = vmatmul.mubr.f32.vlgmr.msra.gmra.mxu1 %v767_v28  ;;  %2330 = vmatpush3.msra.mxu0 %v1882_v30  ;;  %v1916_v28 = vld [vmem:[%s3188_s5 + $0x178] sm:$0xff] }
 0x1fd   : > { %2331 = vmatprep.subr.mxu0 %v1897_v23  ;;  %2017 = vmatprep.subr.mxu1 %v2653_v0  ;;  %v1434_v15 = vpop.f32.mrf.mxu1  ;;  %v1924_v30 = vld [vmem:[%s3188_s5 + $0x1b8] sm:$0xff]  ;;  %v1366_v23 = vadd.f32 %v1365_v35, %v1280_v26 }
 0x1fe   : > { %2332 = vmatpush3.msra.mxu0 %v1881_v36  ;;  %2018 = vmatpush1.msra.mxu1 %v1916_v28  ;;  %v1435_v36 = vadd.f32 %v1434_v15, %v1364_v12  ;;  %v2321_v15 = vld [vmem:[#allocation10] ss:$0 sm:$0xff] }
 0x1ff   : > { %2333 = vmatprep.subr.mxu0 %v1896_v37  ;;  %2019 = vmatprep.subr.mxu1 %v2653_v0  ;;  %v1436_v22 = vpop.f32.mrf.mxu1 }
 0x200   : > { %2334 = vmatpush3.msra.mxu0 %v1880_v41  ;;  %2020 = vmatpush1.msra.mxu1 %v1915_v45 }
 0x201   : > { %2335 = vmatprep.subr.mxu0 %v1895_v43  ;;  %2021 = vmatprep.subr.mxu1 %v2653_v0  ;;  %v1437_v43 = vadd.f32 %v1436_v22, %v1366_v23 }
 0x202   : > { %2336 = vmatpush3.msra.mxu0 %v1879_v18  ;;  %2022 = vmatpush1.msra.mxu1 %v1914_v49  ;;  %v1921_v49 = vld [vmem:[%s3188_s5 + $0x1a0] sm:$0xff] }
 0x203   : > { %2337 = vmatprep.subr.mxu0 %v1894_v47  ;;  %2023 = vmatprep.subr.mxu1 %v2653_v0 }
 0x204   : > { %2338 = vmatpush3.msra.mxu0 %v1878_v48  ;;  %2024 = vmatpush1.msra.mxu1 %v1913_v54 }
 0x205   : > { %2339 = vmatprep.subr.mxu0 %v1893_v51  ;;  %2025 = vmatprep.subr.mxu1 %v2653_v0 }
 0x206   : > { %2340 = vmatpush3.msra.mxu0 %v1877_v52  ;;  %2026 = vmatpush1.msra.mxu1 %v1912_v42  ;;  %v1920_v52 = vld [vmem:[%s3188_s5 + $0x198] sm:$0xff]  ;;  %v1918_v42 = vld [vmem:[%s3188_s5 + $0x188] sm:$0xff] }
 0x207   : > { %2341 = vmatprep.subr.mxu0 %v1892_v55  ;;  %2027 = vmatprep.subr.mxu1 %v2653_v0 }
 0x208   : > { %2342 = vmatpush3.msra.mxu0 %v1876_v57  ;;  %2028 = vmatpush1.msra.mxu1 %v1911_v60  ;;  %v1919_v57 = vld [vmem:[%s3188_s5 + $0x190] sm:$0xff] }
 0x209   : > { %2343 = vmatprep.subr.mxu0 %v1891_v44  ;;  %2029 = vmatprep.subr.mxu1 %v2653_v0  ;;  %v1917_v44 = vld [vmem:[%s3188_s5 + $0x180] sm:$0xff]  ;;  %v2094_v60 = vld [vmem:[%s3190_s7 + $0x30] sm:$0xff] }
 0x20a   : > { %2344 = vmatpush3.msra.mxu0 %v1875_v59  ;;  %2030 = vmatpush1.msra.mxu1 %v1910_v61  ;;  %v2095_v59 = vld [vmem:[%s3190_s7 + $0x38] sm:$0xff] }
 0x20b   : > { %2345 = vmatprep.subr.mxu0 %v1890_v53  ;;  %2031 = vmatprep.subr.mxu1 %v2653_v0  ;;  %v2093_v53 = vld [vmem:[%s3190_s7 + $0x28] sm:$0xff]  ;;  %v2091_v61 = vld [vmem:[%s3190_s7 + $0x18] sm:$0xff] }
 0x20c   : > { %2346 = vmatpush3.msra.mxu0 %v1874_v56  ;;  %2032 = vmatpush1.msra.mxu1 %v1909_v1  ;;  %v2092_v56 = vld [vmem:[%s3190_s7 + $0x20] sm:$0xff]  ;;  %v1288_v1 = vrot.slane %v3098_v58, %v449_v39  ;;  %v2090_v39 = vld [vmem:[%s3190_s7 + $0x10] sm:$0xff] }
 0x20d   : > { %2347 = vmatprep.subr.mxu0 %v1889_v62  ;;  %2033 = vmatprep.subr.mxu1 %v2653_v0 }
 0x20e   : > { %2348 = vmatpush3.msra.mxu0 %v1873_v63  ;;  %2034 = vmatpush1.msra.mxu1 %v1908_v4  ;;  %v1284_v63 = vrot.slane %v3098_v58, %v445_v38 }
 0x20f   : > { %2349 = vmatprep.subr.mxu0 %v1888_v2  ;;  %2035 = vmatprep.subr.mxu1 %v2653_v0 }
 0x210   : > { %2350 = vmatpush3.msra.mxu0 %v1872_v3  ;;  %2036 = vmatpush1.msra.mxu1 %v1907_v7 }
 0x211   : > { %2351 = vmatprep.subr.mxu0 %v1887_v5  ;;  %2037 = vmatprep.subr.mxu1 %v2653_v0 }
 0x212   : > { %2352 = vmatpush3.msra.mxu0 %v1871_v6  ;;  %2038 = vmatpush1.msra.mxu1 %v1906_v10 }
 0x213   : > { %2353 = vmatprep.subr.mxu0 %v1886_v8  ;;  %2039 = vmatprep.subr.mxu1 %v2653_v0 }
 0x214   : > { %2354 = vmatpush3.msra.mxu0 %v1870_v9  ;;  %2040 = vmatpush1.msra.mxu1 %v1905_v14 }
 0x215   : > { %2355 = vmatprep.subr.mxu0 %v1885_v11  ;;  %2041 = vmatprep.subr.mxu1 %v2653_v0 }
 0x216   : > { %2356 = vmatpush3.msra.mxu0 %v1869_v13  ;;  %2042 = vmatpush1.msra.mxu1 %v1904_v16 }
 0x217   : > { %2369 = vmatprep.subr.mxu0 %v2653_v0  ;;  %2043 = vmatprep.subr.mxu1 %v2653_v0 }
 0x218   : > { %2044 = vmatpush1.msra.mxu1 %v1903_v17 }
 0x219   : > { %2045 = vmatprep.subr.mxu1 %v2653_v0 }
 0x21a   : > { %2046 = vmatpush1.msra.mxu1 %v1902_v19 }
 0x21b   : > { %2047 = vmatprep.subr.mxu1 %v2653_v0 }
 0x21c   : > { %2048 = vmatpush1.msra.mxu1 %v1901_v20  ;;  %v2089_v20 = vld [vmem:[%s3190_s7 + $0x8] sm:$0xff] }
 0x21d   : > { %2051 = vmatprep.subr.mxu1 %v2653_v0 }
 0x21e   : > { %2319 = vmatpush2.msk.msra.mxu1 %vm1943_vm2, %v1931_v33  ;;  %v2088_v33 = vld [vmem:[%s3190_s7] sm:$0xff] }
 0x21f   : > { %2053 = vmatprep.subr.mxu1 %v2653_v0 }
 0x220   : > { %2054 = vmatpush2.msra.mxu1 %v1930_v21 }
 0x221   : > { %2055 = vmatprep.subr.mxu1 %v2653_v0 }
 0x222   : > { %2056 = vmatpush2.msra.mxu1 %v1929_v24 }
 0x223   : > { %2057 = vmatprep.subr.mxu1 %v2653_v0 }
 0x224   : > { %2058 = vmatpush2.msra.mxu1 %v1928_v25 }
 0x225   : > { %2059 = vmatprep.subr.mxu1 %v2653_v0 }
 0x226   : > { %2060 = vmatpush2.msra.mxu1 %v1927_v40  ;;  %v2318_v40 = vld [vmem:[#allocation9] ss:$0 sm:$0xff] }
 0x227   : > { %2061 = vmatprep.subr.mxu1 %v2653_v0 }
 0x228   : > { %2062 = vmatpush2.msra.mxu1 %v1926_v46 }
 0x229   : > { %2063 = vmatprep.subr.mxu1 %v2653_v0 }
 0x22a   : > { %2064 = vmatpush2.msra.mxu1 %v1925_v50 }
 0x22b   : > { %2065 = vmatprep.subr.mxu1 %v2653_v0 }
 0x22c   : > { %2066 = vmatpush2.msra.mxu1 %v1924_v30 }
 0x22d   : > { %2067 = vmatprep.subr.mxu1 %v2653_v0 }
 0x22e   : > { %2068 = vmatpush2.msra.mxu1 %v1923_v32 }
 0x22f   : > { %2069 = vmatprep.subr.mxu1 %v2653_v0 }
 0x230   : > { %2070 = vmatpush2.msra.mxu1 %v1922_v34 }
 0x231   : > { %2071 = vmatprep.subr.mxu1 %v2653_v0 }
 0x232   : > { %2072 = vmatpush2.msra.mxu1 %v1921_v49 }
 0x233   : > { %2073 = vmatprep.subr.mxu1 %v2653_v0 }
 0x234   : > { %2074 = vmatpush2.msra.mxu1 %v1920_v52 }
 0x235   : > { %2075 = vmatprep.subr.mxu1 %v2653_v0 }
 0x236   : > { %2076 = vmatpush2.msra.mxu1 %v1919_v57 }
 0x237   : > { %2077 = vmatprep.subr.mxu1 %v2653_v0 }
 0x238   : > { %v1505_v37 = vpop.f32.mrf.mxu0  ;;  %v1576_v41 = vpop.f32.mrf.mxu1  ;;  %2078 = vmatpush2.msra.mxu1 %v1918_v42 }
 0x239   : > { %v1506_v18 = vadd.f32 %v1505_v37, %v1435_v36  ;;  %2079 = vmatprep.subr.mxu1 %v2653_v0 }
 0x23a   : > { %v1507_v28 = vpop.f32.mrf.mxu0  ;;  %v1578_v48 = vpop.f32.mrf.mxu1  ;;  %2080 = vmatpush2.msra.mxu1 %v1917_v44 }
 0x23b   : > { %v1508_v45 = vadd.f32 %v1507_v28, %v1437_v43  ;;  %v1577_v47 = vadd.f32 %v1576_v41, %v1506_v18 }
 0x23d   : > { %v1579_v51 = vadd.f32 %v1578_v48, %v1508_v45  ;;  %v1865_v55 = vmax.f32 %v1577_v47, 0.0 }
 0x23f   : > { %v1866_v54 = vmax.f32 %v1579_v51, 0.0 }
 0x241   : > { %2011 = vmatprep.mubr.f32.mxu0 %v1866_v54 }
 0x242   : > { %2012 = vmatmul.mubr.f32.vlgmr.msra.gmra.mxu0 %v1865_v55 }
 0x243   : > { %2370 = vmatpush3.msra.mxu0 %v2095_v59  ;;  %2385 = vmatprep.mubr.msk.f32.mxu0 %vm2654_vm4, %v2653_v0 }
 0x244   : > { %2371 = vmatprep.subr.mxu0 %v2653_v0 }
 0x245   : > { %2372 = vmatpush3.msra.mxu0 %v2094_v60 }
 0x246   : > { %2373 = vmatprep.subr.mxu0 %v2653_v0 }
 0x247   : > { %2374 = vmatpush3.msra.mxu0 %v2093_v53 }
 0x248   : > { %2375 = vmatprep.subr.mxu0 %v2653_v0 }
 0x249   : > { %2376 = vmatpush3.msra.mxu0 %v2092_v56 }
 0x24a   : > { %2377 = vmatprep.subr.mxu0 %v2653_v0 }
 0x24b   : > { %2378 = vmatpush3.msra.mxu0 %v2091_v61 }
 0x24c   : > { %2379 = vmatprep.subr.mxu0 %v2653_v0 }
 0x24d   : > { %2380 = vmatpush3.msra.mxu0 %v2090_v39 }
 0x24e   : > { %2381 = vmatprep.subr.mxu0 %v2653_v0 }
 0x24f   : > { %2382 = vmatpush3.msra.mxu0 %v2089_v20 }
 0x250   : > { %2383 = vmatprep.subr.mxu0 %v2653_v0 }
 0x251   : > { %2384 = vmatpush3.msra.mxu0 %v2088_v33 }
 0x27a   : > { %v1647_v62 = vpop.f32.mrf.mxu1  ;;  %v1718_v2 = vpop.f32.mrf.mxu0 }
 0x27b   : > { %v1648_v4 = vadd.f32 %v1647_v62, %v1284_v63 }
 0x27c   : > { %v1649_v3 = vpop.f32.mrf.mxu1  ;;  %v1720_v6 = vpop.f32.mrf.mxu0 }
 0x27d   : > { %v1650_v5 = vadd.f32 %v1649_v3, %v1288_v1  ;;  %v1719_v7 = vadd.f32 %v1718_v2, %v1648_v4 }
 0x27f   : > { %v1721_v10 = vadd.f32 %v1720_v6, %v1650_v5 }
 0x2b6   : > { %v1860_v8 = vpop.f32.mrf.mxu0 }
 0x2b8   : > { %v1862_v16 = vpop.f32.mrf.mxu0 }
 0x2bc   : > { %v1789_v9 = vpop.f32.mrf.mxu1 }
 0x2bd   : > { %v1790_v11 = vadd.f32 %v1789_v9, %v1719_v7 }
 0x2be   : > { %v1791_v13 = vpop.f32.mrf.mxu1 }
 0x2bf   : > { %v1792_v14 = vadd.f32 %v1791_v13, %v1721_v10  ;;  %v1861_v17 = vadd.f32 %v1860_v8, %v1790_v11 }
 0x2c1   : > { %v1863_v19 = vadd.f32 %v1862_v16, %v1792_v14  ;;  %v1867_v31 = vmax.f32 %v1861_v17, 0.0 }
 0x2c3   : > { %v1868_v38 = vmax.f32 %v1863_v19, 0.0 }
 0x2c5   : > { %2320 = vmatprep.mubr.msk.f32.mxu1 %vm1939_vm3, %v1868_v38 }
 0x2c6   : > { %2082 = vmatmul.mubr.f32.vlgmr.msra.gmra.mxu1 %v1867_v31 }
 0x302   : > { %v2357_v21 = vpop.f32.mrf.mxu0 }
 0x304   : > { %v2358_v24 = vpop.f32.mrf.mxu0 }
 0x305   : > { %v2359_v25 = vadd.f32 %v2358_v24, %v2357_v21 }
 0x307   : > { %v2014_v46 = vadd.f32 %v2359_v25, %v2318_v40 }
 0x386   : > { %v2083_v50 = vpop.f32.mrf.mxu1 }
 0x387   : > { %v2084_v58 = vadd.f32 %v2083_v50, %v2014_v46 }
 0x388   : > { %v2085_v27 = vpop.f32.mrf.mxu1 }
 0x389   : > { %v2087_v29 = vmax.f32 %v2084_v58, 0.0 }
 0x38b   : > { %2386 = vmatmul.mubr.msk.f32.vlgmr.msra.gmra.mxu0 %vm2103_vm5, %v2087_v29 }
 0x44b   : > { %v2173_v26 = vpop.f32.mrf.mxu0 }
 0x44c   : > { %v2174_v35 = vadd.f32 %v2321_v15, %v2173_v26 }
 0x44d   : > { %v2387_v0 = vpop.f32.mrf.mxu0 }
 0x44e   : > { %v2177_v12 = vmax.f32 %v2174_v35, 0.0 }
 0x450   : > { %2179 = vst.msk [vmem:[%s407_s19] sm:$0xff] %vm2178_vm6, %v2177_v12 }
 0x451 PF: > { %s23_s30 = sadd.s32 1, %s2641_s30  }
 0x452   : > { %p20_p9 = scmp.ge.s32.totalorder %s23_s30, 4  }
 0x454   :  { %22 = sbr.rel (!%p20_p9) target bundleno = 4 (0x4), region = 111 }
 0x459   :  { %2199 = vsyncpa [#allocation3], 1 }
 0x45a   :  { %2201 = vsyncpa [#allocation3 + $0x1], 1 }
 0x45b   :  { %2202 = vsyncpa [#allocation5], 1 }
 0x45c   :  { %2203 = vsyncpa [#allocation8], 1 }
 0x45d   :  { %2204 = vsyncpa [#allocation11], 1 }

</bundles_post_ra>
